<compile_context>
chip_gen: v7x
topology: tpu7x:2x2x1
jax: 0.10.0
libtpu: 0.0.40
codegen_flags: <defaults>
</compile_context>

<pallas_src>
import math
import functools

import jax
import jax.numpy as jnp
from jax.experimental import pallas as pl
from jax.experimental.pallas import tpu as pltpu


# --------------------------------------------------------------------------
# Tiling helper
# --------------------------------------------------------------------------

def _pick_tile(dim, target, align):
    """Largest multiple of `align` <= target that evenly divides dim; else dim."""
    if dim <= align or dim % align != 0:
        return dim
    t = min(target, dim)
    t -= t % align
    while t >= align:
        if dim % t == 0:
            return t
        t -= align
    return dim


# --------------------------------------------------------------------------
# Pallas kernels
# --------------------------------------------------------------------------

def _linear_kernel(x_ref, w_ref, b_ref, o_ref, acc_ref, *, relu):
    # grid = (M_tiles, N_tiles, K_tiles); K is the trailing reduction axis.
    k = pl.program_id(2)

    @pl.when(k == 0)
    def _():
        acc_ref[...] = jnp.zeros_like(acc_ref)

    acc_ref[...] += jnp.dot(x_ref[...].astype(jnp.bfloat16),
                            w_ref[...].astype(jnp.bfloat16),
                            preferred_element_type=jnp.float32)

    @pl.when(k == pl.num_programs(2) - 1)
    def _():
        y = acc_ref[...] + b_ref[...]
        if relu:
            y = jnp.maximum(y, 0.0)
        o_ref[...] = y


def _linear_add_ln_kernel(x_ref, w_ref, b_ref, r_ref, g_ref, bt_ref,
                          o_ref, acc_ref):
    # Fused:  LayerNorm( residual + (x @ w + b) ), eps = 1e-5.
    # grid = (M_tiles, K_tiles); output block covers the full feature dim.
    k = pl.program_id(1)

    @pl.when(k == 0)
    def _():
        acc_ref[...] = jnp.zeros_like(acc_ref)

    acc_ref[...] += jnp.dot(x_ref[...].astype(jnp.bfloat16),
                            w_ref[...].astype(jnp.bfloat16),
                            preferred_element_type=jnp.float32)

    @pl.when(k == pl.num_programs(1) - 1)
    def _():
        z = acc_ref[...] + b_ref[...] + r_ref[...]
        mean = jnp.mean(z, axis=-1, keepdims=True)
        var = jnp.mean((z - mean) ** 2, axis=-1, keepdims=True)
        n = (z - mean) * jax.lax.rsqrt(var + 1e-5)
        o_ref[...] = n * g_ref[...] + bt_ref[...]


def _attention_kernel(q_ref, k_ref, v_ref, kp_ref, o_ref, *,
                      n_heads, scale, causal):
    # One batch element per grid step; all heads computed here.
    # q: (1, Sq, D)  k,v: (1, Skv, D)  kp: (1, 1, Skv)  o: (1, Sq, D)
    _, Sq, D = q_ref.shape
    _, Skv, _ = k_ref.shape
    dk = D // n_heads

    q = q_ref[0]
    k = k_ref[0]
    v = v_ref[0]

    keep = kp_ref[0] > 0.0                       # (1, Skv), broadcasts over rows
    if causal:
        row = jax.lax.broadcasted_iota(jnp.int32, (Sq, Skv), 0)
        col = jax.lax.broadcasted_iota(jnp.int32, (Sq, Skv), 1)
        keep = jnp.logical_and(keep, col <= row)  # (Sq, Skv)

    neg = jnp.float32(-1e9)
    outs = []
    for h in range(n_heads):                      # static unroll over heads
        lo = h * dk
        qh = q[:, lo:lo + dk]
        kh = k[:, lo:lo + dk]
        vh = v[:, lo:lo + dk]
        s = jax.lax.dot_general(qh, kh, (((1,), (1,)), ((), ())),
                                preferred_element_type=jnp.float32) * scale
        s = jnp.where(keep, s, neg)               # masked_fill(mask==0, -1e9)
        s = s - jnp.max(s, axis=-1, keepdims=True)
        e = jnp.exp(s)
        p = e * pl.reciprocal(jnp.sum(e, axis=-1, keepdims=True), approx=True)
        outs.append(jnp.dot(p, vh, preferred_element_type=jnp.float32))

    # Single lane-dense (Sq, D) store instead of per-head masked stores.
    o_ref[0] = jnp.concatenate(outs, axis=-1)


# --------------------------------------------------------------------------
# Kernel wrappers
# --------------------------------------------------------------------------

def linear(x, w, b, relu=False):
    """y = x @ w + b (optionally ReLU), tiled matmul with K-reduction grid."""
    lead = x.shape[:-1]
    K = x.shape[-1]
    N = w.shape[1]
    M = int(math.prod(lead))
    x2 = x.reshape(M, K)

    tm = _pick_tile(M, 256, 8)     # conservative tiles: fit v7x 64 MiB VMEM
    tn = _pick_tile(N, 512, 128)   # with 2x double-buffering comfortably
    tk = _pick_tile(K, 512, 128)
    grid = (M // tm, N // tn, K // tk)

    kern = functools.partial(_linear_kernel, relu=relu)
    out = pl.pallas_call(
        kern,
        out_shape=jax.ShapeDtypeStruct((M, N), jnp.float32),
        grid_spec=pltpu.PrefetchScalarGridSpec(
            num_scalar_prefetch=0,
            grid=grid,
            in_specs=[
                pl.BlockSpec((tm, tk), lambda i, j, k: (i, k)),
                pl.BlockSpec((tk, tn), lambda i, j, k: (k, j)),
                pl.BlockSpec((1, tn), lambda i, j, k: (0, j)),
            ],
            out_specs=pl.BlockSpec((tm, tn), lambda i, j, k: (i, j)),
            scratch_shapes=[pltpu.VMEM((tm, tn), jnp.float32)],
        ),
        compiler_params=pltpu.CompilerParams(
            dimension_semantics=("parallel", "parallel", "arbitrary")),
    )(x2, w, b.reshape(1, N))
    return out.reshape(*lead, N)


def linear_add_layernorm(x, residual, w, b, gamma, beta):
    """LayerNorm(residual + (x @ w + b)) fused in one kernel."""
    lead = x.shape[:-1]
    K = x.shape[-1]
    D = w.shape[1]
    M = int(math.prod(lead))

    tm = _pick_tile(M, 256, 8)
    tk = _pick_tile(K, 512, 128)
    grid = (M // tm, K // tk)

    out = pl.pallas_call(
        _linear_add_ln_kernel,
        out_shape=jax.ShapeDtypeStruct((M, D), jnp.float32),
        grid_spec=pltpu.PrefetchScalarGridSpec(
            num_scalar_prefetch=0,
            grid=grid,
            in_specs=[
                pl.BlockSpec((tm, tk), lambda i, k: (i, k)),
                pl.BlockSpec((tk, D), lambda i, k: (k, 0)),
                pl.BlockSpec((1, D), lambda i, k: (0, 0)),
                pl.BlockSpec((tm, D), lambda i, k: (i, 0)),
                pl.BlockSpec((1, D), lambda i, k: (0, 0)),
                pl.BlockSpec((1, D), lambda i, k: (0, 0)),
            ],
            out_specs=pl.BlockSpec((tm, D), lambda i, k: (i, 0)),
            scratch_shapes=[pltpu.VMEM((tm, D), jnp.float32)],
        ),
        compiler_params=pltpu.CompilerParams(
            dimension_semantics=("parallel", "arbitrary")),
    )(x.reshape(M, K), w, b.reshape(1, D), residual.reshape(M, D),
      gamma.reshape(1, D), beta.reshape(1, D))
    return out.reshape(*lead, D)


def attention(q, k, v, key_pad, n_heads, causal):
    """All-heads scaled dot-product attention in (B, S, D) layout.

    q: (B,Sq,D)  k,v: (B,Skv,D)  key_pad: (B,1,Skv) float (1 keep / 0 mask).
    """
    B, Sq, D = q.shape
    Skv = k.shape[1]
    dk = D // n_heads
    scale = 1.0 / math.sqrt(dk)
    kern = functools.partial(_attention_kernel, n_heads=n_heads,
                             scale=scale, causal=causal)
    # TODO(synk): for long sequences convert to a flash-style kernel with a KV
    # grid axis and running max/sum scratch; full Sq x Skv scores are fine here.
    return pl.pallas_call(
        kern,
        out_shape=jax.ShapeDtypeStruct((B, Sq, D), jnp.float32),
        grid=(B,),
        in_specs=[
            pl.BlockSpec((1, Sq, D), lambda b: (b, 0, 0)),
            pl.BlockSpec((1, Skv, D), lambda b: (b, 0, 0)),
            pl.BlockSpec((1, Skv, D), lambda b: (b, 0, 0)),
            pl.BlockSpec((1, 1, Skv), lambda b: (b, 0, 0)),
        ],
        out_specs=pl.BlockSpec((1, Sq, D), lambda b: (b, 0, 0)),
        compiler_params=pltpu.CompilerParams(
            dimension_semantics=("parallel",)),
    )(q, k, v, key_pad)


# --------------------------------------------------------------------------
# Model pieces (parameter setup + glue in plain JAX, compute in kernels)
# --------------------------------------------------------------------------

def _xavier(key, shape):
    fan_in, fan_out = shape[0], shape[1]
    a = math.sqrt(6.0 / (fan_in + fan_out))
    return jax.random.uniform(key, shape, jnp.float32, -a, a)


def _init_linear(key, d_in, d_out):
    kw, kb = jax.random.split(key)
    return {"w": _xavier(kw, (d_in, d_out)),
            "b": jax.random.uniform(kb, (d_out,), jnp.float32, -0.01, 0.01)}


def _init_mha(key, d_model, fuse_qkv):
    ks = jax.random.split(key, 4)
    wq = _init_linear(ks[0], d_model, d_model)
    wk = _init_linear(ks[1], d_model, d_model)
    wv = _init_linear(ks[2], d_model, d_model)
    wo = _init_linear(ks[3], d_model, d_model)
    p = {"wo": wo}
    if fuse_qkv:                                  # self-attention: fuse Q|K|V
        p["w_qkv"] = jnp.concatenate([wq["w"], wk["w"], wv["w"]], axis=1)
        p["b_qkv"] = jnp.concatenate([wq["b"], wk["b"], wv["b"]])
    else:                                         # cross-attention: fuse K|V
        p["w_q"], p["b_q"] = wq["w"], wq["b"]
        p["w_kv"] = jnp.concatenate([wk["w"], wv["w"]], axis=1)
        p["b_kv"] = jnp.concatenate([wk["b"], wv["b"]])
    return p


def _init_ln(d_model):
    return {"g": jnp.ones((d_model,), jnp.float32),
            "b": jnp.zeros((d_model,), jnp.float32)}


def _init_enc_layer(key, d_model, d_ff):
    ks = jax.random.split(key, 3)
    return {"self_attn": _init_mha(ks[0], d_model, fuse_qkv=True),
            "ff1": _init_linear(ks[1], d_model, d_ff),
            "ff2": _init_linear(ks[2], d_ff, d_model),
            "norm1": _init_ln(d_model), "norm2": _init_ln(d_model)}


def _init_dec_layer(key, d_model, d_ff):
    ks = jax.random.split(key, 4)
    return {"self_attn": _init_mha(ks[0], d_model, fuse_qkv=True),
            "cross_attn": _init_mha(ks[1], d_model, fuse_qkv=False),
            "ff1": _init_linear(ks[2], d_model, d_ff),
            "ff2": _init_linear(ks[3], d_ff, d_model),
            "norm1": _init_ln(d_model), "norm2": _init_ln(d_model),
            "norm3": _init_ln(d_model)}


def init_transformer(key, src_vocab, tgt_vocab, d_model, n_heads, n_layers, d_ff):
    ks = jax.random.split(key, 2 * n_layers + 3)
    return {
        "src_emb": _xavier(ks[0], (src_vocab, d_model)),
        "tgt_emb": _xavier(ks[1], (tgt_vocab, d_model)),
        "enc_layers": [_init_enc_layer(ks[2 + i], d_model, d_ff)
                       for i in range(n_layers)],
        "dec_layers": [_init_dec_layer(ks[2 + n_layers + i], d_model, d_ff)
                       for i in range(n_layers)],
        "final": _init_linear(ks[2 + 2 * n_layers], d_model, tgt_vocab),
    }


def positional_encoding(max_len, d_model):
    pos = jnp.arange(max_len, dtype=jnp.float32)[:, None]
    div = jnp.exp(jnp.arange(0, d_model, 2, dtype=jnp.float32)
                  * (-math.log(10000.0) / d_model))
    pe = jnp.zeros((max_len, d_model), jnp.float32)
    pe = pe.at[:, 0::2].set(jnp.sin(pos * div))
    pe = pe.at[:, 1::2].set(jnp.cos(pos * div))
    return pe[:, None, :]                       # (max_len, 1, d_model)


def mha_core(p, x_q, x_kv, key_pad, n_heads, causal):
    """Q/K/V projections (fused) + attention; returns pre-w_o output (B,S,D)."""
    D = x_q.shape[-1]
    if "w_qkv" in p:                            # self-attention
        qkv = linear(x_q, p["w_qkv"], p["b_qkv"])           # (B,S,3D)
        q, k, v = qkv[..., :D], qkv[..., D:2 * D], qkv[..., 2 * D:]
    else:                                       # cross-attention
        q = linear(x_q, p["w_q"], p["b_q"])
        kv = linear(x_kv, p["w_kv"], p["b_kv"])             # (B,Skv,2D)
        k, v = kv[..., :D], kv[..., D:]
    return attention(q, k, v, key_pad, n_heads, causal)


def encoder_layer_forward(p, x, src_keypad, n_heads):
    a = mha_core(p["self_attn"], x, x, src_keypad, n_heads, causal=False)
    x = linear_add_layernorm(a, x, p["self_attn"]["wo"]["w"],
                             p["self_attn"]["wo"]["b"],
                             p["norm1"]["g"], p["norm1"]["b"])
    h = linear(x, p["ff1"]["w"], p["ff1"]["b"], relu=True)
    x = linear_add_layernorm(h, x, p["ff2"]["w"], p["ff2"]["b"],
                             p["norm2"]["g"], p["norm2"]["b"])
    return x


def decoder_layer_forward(p, x, enc_out, src_keypad, tgt_keypad, n_heads):
    sa = mha_core(p["self_attn"], x, x, tgt_keypad, n_heads, causal=True)
    x = linear_add_layernorm(sa, x, p["self_attn"]["wo"]["w"],
                             p["self_attn"]["wo"]["b"],
                             p["norm1"]["g"], p["norm1"]["b"])
    ca = mha_core(p["cross_attn"], x, enc_out, src_keypad, n_heads, causal=False)
    x = linear_add_layernorm(ca, x, p["cross_attn"]["wo"]["w"],
                             p["cross_attn"]["wo"]["b"],
                             p["norm2"]["g"], p["norm2"]["b"])
    h = linear(x, p["ff1"]["w"], p["ff1"]["b"], relu=True)
    x = linear_add_layernorm(h, x, p["ff2"]["w"], p["ff2"]["b"],
                             p["norm3"]["g"], p["norm3"]["b"])
    return x


def transformer_forward(params, src, tgt, pe, d_model, n_heads,
                        src_pad_idx=0, tgt_pad_idx=0):
    B, S_src = src.shape
    _, S_tgt = tgt.shape

    # key-padding vectors (masks are rebuilt in-kernel; no (B,S,S) f32 in HBM)
    src_keypad = (src != src_pad_idx).astype(jnp.float32).reshape(B, 1, S_src)
    tgt_keypad = (tgt != tgt_pad_idx).astype(jnp.float32).reshape(B, 1, S_tgt)

    # --- encoder ---------------------------------------------------------
    # Embedding gather stays in XLA (no tiling win for a tiny table lookup).
    x = params["src_emb"][src] * math.sqrt(d_model)                 # (B,S,D)
    x = x + pe[:B]            # reproduces PyTorch pe[:x.size(0)] (batch-first quirk)
    for lp in params["enc_layers"]:
        x = encoder_layer_forward(lp, x, src_keypad, n_heads)
    enc_out = x

    # --- decoder ---------------------------------------------------------
    y = params["tgt_emb"][tgt] * math.sqrt(d_model)
    y = y + pe[:B]
    for lp in params["dec_layers"]:
        y = decoder_layer_forward(lp, y, enc_out, src_keypad, tgt_keypad,
                                  n_heads)

    # --- final projection -------------------------------------------------
    return linear(y, params["final"]["w"], params["final"]["b"])


# --------------------------------------------------------------------------
# Main
# --------------------------------------------------------------------------

if __name__ == "__main__":
    SRC_VOCAB, TGT_VOCAB = 50, 48
    D_MODEL, N_HEADS, N_LAYERS, D_FF = 32, 4, 2, 64
    B, S_SRC, S_TGT, MAX_LEN = 2, 8, 8, 64

    key = jax.random.PRNGKey(0)
    k_params, k_src, k_tgt = jax.random.split(key, 3)

    params = init_transformer(k_params, SRC_VOCAB, TGT_VOCAB,
                              D_MODEL, N_HEADS, N_LAYERS, D_FF)
    pe = positional_encoding(MAX_LEN, D_MODEL)

    src = jax.random.randint(k_src, (B, S_SRC), 1, SRC_VOCAB, dtype=jnp.int32)
    tgt = jax.random.randint(k_tgt, (B, S_TGT), 1, TGT_VOCAB, dtype=jnp.int32)
    # introduce some padding tokens to exercise the padding masks
    src = src.at[0, -2:].set(0)
    tgt = tgt.at[1, -1:].set(0)

    fwd = jax.jit(functools.partial(transformer_forward,
                                    d_model=D_MODEL, n_heads=N_HEADS))
    out = fwd(params, src, tgt, pe)
    out = jax.block_until_ready(out)

    assert out.shape == (B, S_TGT, TGT_VOCAB), out.shape
    assert bool(jnp.all(jnp.isfinite(out)))
    print("KERNEL_OK")
</pallas_src>

<mosaic_0001>
module attributes {stable_mosaic.version = 11 : i64} {
  func.func @_linear_kernel(%arg0: i32, %arg1: i32, %arg2: i32, %arg3: memref<16x32xf32, #tpu.memory_space<vmem>>, %arg4: memref<32x96xf32, #tpu.memory_space<vmem>>, %arg5: memref<1x96xf32, #tpu.memory_space<vmem>>, %arg6: memref<16x96xf32, #tpu.memory_space<vmem>>, %arg7: memref<16x96xf32, #tpu.memory_space<vmem>>) attributes {dimension_semantics = [#tpu.dimension_semantics<parallel>, #tpu.dimension_semantics<parallel>, #tpu.dimension_semantics<arbitrary>], iteration_bounds = array<i64: 1, 1, 1>, scalar_prefetch = 0 : i64, scratch_operands = 1 : i64, tpu.core_type = #tpu.core_type<tc>, window_params = [{transform_indices = @transform_0, window_bounds = array<i64: 16, 32>}, {transform_indices = @transform_1, window_bounds = array<i64: 32, 96>}, {transform_indices = @transform_2, window_bounds = array<i64: 1, 96>}, {transform_indices = @transform_3, window_bounds = array<i64: 16, 96>}]} {
    %c0_i32 = arith.constant 0 : i32
    %0 = arith.cmpi eq, %arg2, %c0_i32 : i32
    %1 = arith.extui %0 : i1 to i32
    %c0_i32_0 = arith.constant 0 : i32
    %2 = arith.cmpi ne, %1, %c0_i32_0 : i32
    scf.if %2 {
      %cst_10 = arith.constant 0.000000e+00 : f32
      %14 = vector.broadcast %cst_10 : f32 to vector<16x96xf32>
      %c0_11 = arith.constant 0 : index
      %c0_12 = arith.constant 0 : index
      %15 = vector.load %arg7[%c0_11, %c0_12] : memref<16x96xf32, #tpu.memory_space<vmem>>, vector<16x96xf32>
      tpu.vector_store %arg7[%c0_11, %c0_12], %14 {strides = array<i32>} : memref<16x96xf32, #tpu.memory_space<vmem>>, vector<16x96xf32>,
    } else {
    }
    %c0 = arith.constant 0 : index
    %c0_1 = arith.constant 0 : index
    %3 = vector.load %arg7[%c0, %c0_1] : memref<16x96xf32, #tpu.memory_space<vmem>>, vector<16x96xf32>
    %c0_2 = arith.constant 0 : index
    %c0_3 = arith.constant 0 : index
    %4 = vector.load %arg3[%c0_2, %c0_3] : memref<16x32xf32, #tpu.memory_space<vmem>>, vector<16x32xf32>
    %5 = arith.truncf %4 : vector<16x32xf32> to vector<16x32xbf16>
    %c0_4 = arith.constant 0 : index
    %c0_5 = arith.constant 0 : index
    %6 = vector.load %arg4[%c0_4, %c0_5] : memref<32x96xf32, #tpu.memory_space<vmem>>, vector<32x96xf32>
    %7 = arith.truncf %6 : vector<32x96xf32> to vector<32x96xbf16>
    %cst = arith.constant dense<0.000000e+00> : vector<16x96xf32>
    %8 = tpu.matmul %5, %7, %cst {dimension_numbers = #tpu.dot_dimension_numbers<[1], [0], [0], [1], [0, 0, 1, 1], [], []>} : vector<16x32xbf16>, vector<32x96xbf16>, vector<16x96xf32> -> vector<16x96xf32>
    %9 = arith.addf %3, %8 : vector<16x96xf32>
    %c0_6 = arith.constant 0 : index
    %c0_7 = arith.constant 0 : index
    %10 = vector.load %arg7[%c0_6, %c0_7] : memref<16x96xf32, #tpu.memory_space<vmem>>, vector<16x96xf32>
    tpu.vector_store %arg7[%c0_6, %c0_7], %9 {strides = array<i32>} : memref<16x96xf32, #tpu.memory_space<vmem>>, vector<16x96xf32>,
    %c0_i32_8 = arith.constant 0 : i32
    %11 = arith.cmpi eq, %arg2, %c0_i32_8 : i32
    %12 = arith.extui %11 : i1 to i32
    %c0_i32_9 = arith.constant 0 : i32
    %13 = arith.cmpi ne, %12, %c0_i32_9 : i32
    scf.if %13 {
      %c0_10 = arith.constant 0 : index
      %c0_11 = arith.constant 0 : index
      %14 = vector.load %arg7[%c0_10, %c0_11] : memref<16x96xf32, #tpu.memory_space<vmem>>, vector<16x96xf32>
      %c0_12 = arith.constant 0 : index
      %c0_13 = arith.constant 0 : index
      %15 = vector.load %arg5[%c0_12, %c0_13] : memref<1x96xf32, #tpu.memory_space<vmem>>, vector<1x96xf32>
      %16 = vector.broadcast %15 : vector<1x96xf32> to vector<16x96xf32>
      %17 = arith.addf %14, %16 : vector<16x96xf32>
      %c0_14 = arith.constant 0 : index
      %c0_15 = arith.constant 0 : index
      %18 = vector.load %arg6[%c0_14, %c0_15] : memref<16x96xf32, #tpu.memory_space<vmem>>, vector<16x96xf32>
      tpu.vector_store %arg6[%c0_14, %c0_15], %17 {strides = array<i32>} : memref<16x96xf32, #tpu.memory_space<vmem>>, vector<16x96xf32>,
    } else {
    }
    return
  }
  func.func @transform_0(%arg0: i32, %arg1: i32, %arg2: i32) -> (i32, i32) {
    %c0_i32 = arith.constant 0 : i32
    return %arg0, %arg2 : i32, i32
  }
  func.func @transform_1(%arg0: i32, %arg1: i32, %arg2: i32) -> (i32, i32) {
    %c0_i32 = arith.constant 0 : i32
    return %arg2, %arg1 : i32, i32
  }
  func.func @transform_2(%arg0: i32, %arg1: i32, %arg2: i32) -> (i32, i32) {
    %c0_i32 = arith.constant 0 : i32
    %c0_i32_0 = arith.constant 0 : i32
    return %c0_i32, %arg1 : i32, i32
  }
  func.func @transform_3(%arg0: i32, %arg1: i32, %arg2: i32) -> (i32, i32) {
    %c0_i32 = arith.constant 0 : i32
    return %arg0, %arg1 : i32, i32
  }
}

module attributes {stable_mosaic.version = 11 : i64} {
  func.func @_attention_kernel(%arg0: i32, %arg1: memref<1x8x32xf32, #tpu.memory_space<vmem>>, %arg2: memref<1x8x32xf32, #tpu.memory_space<vmem>>, %arg3: memref<1x8x32xf32, #tpu.memory_space<vmem>>, %arg4: memref<1x1x8xf32, #tpu.memory_space<vmem>>, %arg5: memref<1x8x32xf32, #tpu.memory_space<vmem>>) attributes {dimension_semantics = [#tpu.dimension_semantics<parallel>], iteration_bounds = array<i64: 2>, scalar_prefetch = 0 : i64, scratch_operands = 0 : i64, tpu.core_type = #tpu.core_type<tc>, window_params = [{transform_indices = @transform_0, window_bounds = array<i64: 1, 8, 32>}, {transform_indices = @transform_1, window_bounds = array<i64: 1, 8, 32>}, {transform_indices = @transform_2, window_bounds = array<i64: 1, 8, 32>}, {transform_indices = @transform_3, window_bounds = array<i64: 1, 1, 8>}, {transform_indices = @transform_4, window_bounds = array<i64: 1, 8, 32>}]} {
    %c0 = arith.constant 0 : index
    %c0_0 = arith.constant 0 : index
    %c0_1 = arith.constant 0 : index
    %0 = vector.load %arg1[%c0, %c0_0, %c0_1] : memref<1x8x32xf32, #tpu.memory_space<vmem>>, vector<1x8x32xf32>
    %1 = vector.shape_cast %0 : vector<1x8x32xf32> to vector<8x32xf32>
    %c0_2 = arith.constant 0 : index
    %c0_3 = arith.constant 0 : index
    %c0_4 = arith.constant 0 : index
    %2 = vector.load %arg2[%c0_2, %c0_3, %c0_4] : memref<1x8x32xf32, #tpu.memory_space<vmem>>, vector<1x8x32xf32>
    %3 = vector.shape_cast %2 : vector<1x8x32xf32> to vector<8x32xf32>
    %c0_5 = arith.constant 0 : index
    %c0_6 = arith.constant 0 : index
    %c0_7 = arith.constant 0 : index
    %4 = vector.load %arg3[%c0_5, %c0_6, %c0_7] : memref<1x8x32xf32, #tpu.memory_space<vmem>>, vector<1x8x32xf32>
    %5 = vector.shape_cast %4 : vector<1x8x32xf32> to vector<8x32xf32>
    %c0_8 = arith.constant 0 : index
    %c0_9 = arith.constant 0 : index
    %c0_10 = arith.constant 0 : index
    %6 = vector.load %arg4[%c0_8, %c0_9, %c0_10] : memref<1x1x8xf32, #tpu.memory_space<vmem>>, vector<1x1x8xf32>
    %7 = vector.shape_cast %6 : vector<1x1x8xf32> to vector<1x8xf32>
    %cst = arith.constant 0.000000e+00 : f32
    %8 = vector.broadcast %cst : f32 to vector<1x8xf32>
    %9 = arith.cmpf ogt, %7, %8 : vector<1x8xf32>
    %10 = vector.extract_strided_slice %1 {offsets = [0, 0], sizes = [8, 8], strides = [1, 1]} : vector<8x32xf32> to vector<8x8xf32>
    %11 = vector.extract_strided_slice %3 {offsets = [0, 0], sizes = [8, 8], strides = [1, 1]} : vector<8x32xf32> to vector<8x8xf32>
    %12 = vector.extract_strided_slice %5 {offsets = [0, 0], sizes = [8, 8], strides = [1, 1]} : vector<8x32xf32> to vector<8x8xf32>
    %cst_11 = arith.constant dense<0.000000e+00> : vector<8x8xf32>
    %13 = tpu.matmul %10, %11, %cst_11 {dimension_numbers = #tpu.dot_dimension_numbers<[1], [1], [0], [0], [0, 0, 1, 0], [], []>} : vector<8x8xf32>, vector<8x8xf32>, vector<8x8xf32> -> vector<8x8xf32>
    %cst_12 = arith.constant 0.353553385 : f32
    %14 = vector.broadcast %cst_12 : f32 to vector<8x8xf32>
    %15 = arith.mulf %13, %14 : vector<8x8xf32>
    %cst_13 = arith.constant -1.000000e+09 : f32
    %16 = vector.shape_cast %9 : vector<1x8xi1> to vector<1x8xi1>
    %17 = vector.broadcast %16 : vector<1x8xi1> to vector<8x8xi1>
    %18 = vector.broadcast %cst_13 : f32 to vector<8x8xf32>
    %19 = arith.select %17, %15, %18 : vector<8x8xi1>, vector<8x8xf32>
    %cst_14 = arith.constant dense<0xFF800000> : vector<8xf32>
    %20 = vector.multi_reduction <maximumf>, %19, %cst_14 [1] : vector<8x8xf32> to vector<8xf32>
    %21 = vector.shape_cast %20 : vector<8xf32> to vector<8x1xf32>
    %22 = vector.broadcast %21 : vector<8x1xf32> to vector<8x8xf32>
    %23 = arith.subf %19, %22 : vector<8x8xf32>
    %24 = math.exp %23 : vector<8x8xf32>
    %cst_15 = arith.constant dense<0.000000e+00> : vector<8xf32>
    %25 = vector.multi_reduction <add>, %24, %cst_15 [1] : vector<8x8xf32> to vector<8xf32>
    %26 = vector.shape_cast %25 : vector<8xf32> to vector<8x1xf32>
    %27 = tpu.reciprocal %26 {approx = true} : vector<8x1xf32> -> vector<8x1xf32>
    %28 = vector.broadcast %27 : vector<8x1xf32> to vector<8x8xf32>
    %29 = arith.mulf %24, %28 : vector<8x8xf32>
    %cst_16 = arith.constant dense<0.000000e+00> : vector<8x8xf32>
    %30 = tpu.matmul %29, %12, %cst_16 {dimension_numbers = #tpu.dot_dimension_numbers<[1], [0], [0], [1], [0, 0, 1, 1], [], []>} : vector<8x8xf32>, vector<8x8xf32>, vector<8x8xf32> -> vector<8x8xf32>
    %31 = vector.extract_strided_slice %1 {offsets = [0, 8], sizes = [8, 8], strides = [1, 1]} : vector<8x32xf32> to vector<8x8xf32>
    %32 = vector.extract_strided_slice %3 {offsets = [0, 8], sizes = [8, 8], strides = [1, 1]} : vector<8x32xf32> to vector<8x8xf32>
    %33 = vector.extract_strided_slice %5 {offsets = [0, 8], sizes = [8, 8], strides = [1, 1]} : vector<8x32xf32> to vector<8x8xf32>
    %cst_17 = arith.constant dense<0.000000e+00> : vector<8x8xf32>
    %34 = tpu.matmul %31, %32, %cst_17 {dimension_numbers = #tpu.dot_dimension_numbers<[1], [1], [0], [0], [0, 0, 1, 0], [], []>} : vector<8x8xf32>, vector<8x8xf32>, vector<8x8xf32> -> vector<8x8xf32>
    %cst_18 = arith.constant 0.353553385 : f32
    %35 = vector.broadcast %cst_18 : f32 to vector<8x8xf32>
    %36 = arith.mulf %34, %35 : vector<8x8xf32>
    %cst_19 = arith.constant -1.000000e+09 : f32
    %37 = vector.shape_cast %9 : vector<1x8xi1> to vector<1x8xi1>
    %38 = vector.broadcast %37 : vector<1x8xi1> to vector<8x8xi1>
    %39 = vector.broadcast %cst_19 : f32 to vector<8x8xf32>
    %40 = arith.select %38, %36, %39 : vector<8x8xi1>, vector<8x8xf32>
    %cst_20 = arith.constant dense<0xFF800000> : vector<8xf32>
    %41 = vector.multi_reduction <maximumf>, %40, %cst_20 [1] : vector<8x8xf32> to vector<8xf32>
    %42 = vector.shape_cast %41 : vector<8xf32> to vector<8x1xf32>
    %43 = vector.broadcast %42 : vector<8x1xf32> to vector<8x8xf32>
    %44 = arith.subf %40, %43 : vector<8x8xf32>
    %45 = math.exp %44 : vector<8x8xf32>
    %cst_21 = arith.constant dense<0.000000e+00> : vector<8xf32>
    %46 = vector.multi_reduction <add>, %45, %cst_21 [1] : vector<8x8xf32> to vector<8xf32>
    %47 = vector.shape_cast %46 : vector<8xf32> to vector<8x1xf32>
    %48 = tpu.reciprocal %47 {approx = true} : vector<8x1xf32> -> vector<8x1xf32>
    %49 = vector.broadcast %48 : vector<8x1xf32> to vector<8x8xf32>
    %50 = arith.mulf %45, %49 : vector<8x8xf32>
    %cst_22 = arith.constant dense<0.000000e+00> : vector<8x8xf32>
    %51 = tpu.matmul %50, %33, %cst_22 {dimension_numbers = #tpu.dot_dimension_numbers<[1], [0], [0], [1], [0, 0, 1, 1], [], []>} : vector<8x8xf32>, vector<8x8xf32>, vector<8x8xf32> -> vector<8x8xf32>
    %52 = vector.extract_strided_slice %1 {offsets = [0, 16], sizes = [8, 8], strides = [1, 1]} : vector<8x32xf32> to vector<8x8xf32>
    %53 = vector.extract_strided_slice %3 {offsets = [0, 16], sizes = [8, 8], strides = [1, 1]} : vector<8x32xf32> to vector<8x8xf32>
    %54 = vector.extract_strided_slice %5 {offsets = [0, 16], sizes = [8, 8], strides = [1, 1]} : vector<8x32xf32> to vector<8x8xf32>
    %cst_23 = arith.constant dense<0.000000e+00> : vector<8x8xf32>
    %55 = tpu.matmul %52, %53, %cst_23 {dimension_numbers = #tpu.dot_dimension_numbers<[1], [1], [0], [0], [0, 0, 1, 0], [], []>} : vector<8x8xf32>, vector<8x8xf32>, vector<8x8xf32> -> vector<8x8xf32>
    %cst_24 = arith.constant 0.353553385 : f32
    %56 = vector.broadcast %cst_24 : f32 to vector<8x8xf32>
    %57 = arith.mulf %55, %56 : vector<8x8xf32>
    %cst_25 = arith.constant -1.000000e+09 : f32
    %58 = vector.shape_cast %9 : vector<1x8xi1> to vector<1x8xi1>
    %59 = vector.broadcast %58 : vector<1x8xi1> to vector<8x8xi1>
    %60 = vector.broadcast %cst_25 : f32 to vector<8x8xf32>
    %61 = arith.select %59, %57, %60 : vector<8x8xi1>, vector<8x8xf32>
    %cst_26 = arith.constant dense<0xFF800000> : vector<8xf32>
    %62 = vector.multi_reduction <maximumf>, %61, %cst_26 [1] : vector<8x8xf32> to vector<8xf32>
    %63 = vector.shape_cast %62 : vector<8xf32> to vector<8x1xf32>
    %64 = vector.broadcast %63 : vector<8x1xf32> to vector<8x8xf32>
    %65 = arith.subf %61, %64 : vector<8x8xf32>
    %66 = math.exp %65 : vector<8x8xf32>
    %cst_27 = arith.constant dense<0.000000e+00> : vector<8xf32>
    %67 = vector.multi_reduction <add>, %66, %cst_27 [1] : vector<8x8xf32> to vector<8xf32>
    %68 = vector.shape_cast %67 : vector<8xf32> to vector<8x1xf32>
    %69 = tpu.reciprocal %68 {approx = true} : vector<8x1xf32> -> vector<8x1xf32>
    %70 = vector.broadcast %69 : vector<8x1xf32> to vector<8x8xf32>
    %71 = arith.mulf %66, %70 : vector<8x8xf32>
    %cst_28 = arith.constant dense<0.000000e+00> : vector<8x8xf32>
    %72 = tpu.matmul %71, %54, %cst_28 {dimension_numbers = #tpu.dot_dimension_numbers<[1], [0], [0], [1], [0, 0, 1, 1], [], []>} : vector<8x8xf32>, vector<8x8xf32>, vector<8x8xf32> -> vector<8x8xf32>
    %73 = vector.extract_strided_slice %1 {offsets = [0, 24], sizes = [8, 8], strides = [1, 1]} : vector<8x32xf32> to vector<8x8xf32>
    %74 = vector.extract_strided_slice %3 {offsets = [0, 24], sizes = [8, 8], strides = [1, 1]} : vector<8x32xf32> to vector<8x8xf32>
    %75 = vector.extract_strided_slice %5 {offsets = [0, 24], sizes = [8, 8], strides = [1, 1]} : vector<8x32xf32> to vector<8x8xf32>
    %cst_29 = arith.constant dense<0.000000e+00> : vector<8x8xf32>
    %76 = tpu.matmul %73, %74, %cst_29 {dimension_numbers = #tpu.dot_dimension_numbers<[1], [1], [0], [0], [0, 0, 1, 0], [], []>} : vector<8x8xf32>, vector<8x8xf32>, vector<8x8xf32> -> vector<8x8xf32>
    %cst_30 = arith.constant 0.353553385 : f32
    %77 = vector.broadcast %cst_30 : f32 to vector<8x8xf32>
    %78 = arith.mulf %76, %77 : vector<8x8xf32>
    %cst_31 = arith.constant -1.000000e+09 : f32
    %79 = vector.shape_cast %9 : vector<1x8xi1> to vector<1x8xi1>
    %80 = vector.broadcast %79 : vector<1x8xi1> to vector<8x8xi1>
    %81 = vector.broadcast %cst_31 : f32 to vector<8x8xf32>
    %82 = arith.select %80, %78, %81 : vector<8x8xi1>, vector<8x8xf32>
    %cst_32 = arith.constant dense<0xFF800000> : vector<8xf32>
    %83 = vector.multi_reduction <maximumf>, %82, %cst_32 [1] : vector<8x8xf32> to vector<8xf32>
    %84 = vector.shape_cast %83 : vector<8xf32> to vector<8x1xf32>
    %85 = vector.broadcast %84 : vector<8x1xf32> to vector<8x8xf32>
    %86 = arith.subf %82, %85 : vector<8x8xf32>
    %87 = math.exp %86 : vector<8x8xf32>
    %cst_33 = arith.constant dense<0.000000e+00> : vector<8xf32>
    %88 = vector.multi_reduction <add>, %87, %cst_33 [1] : vector<8x8xf32> to vector<8xf32>
    %89 = vector.shape_cast %88 : vector<8xf32> to vector<8x1xf32>
    %90 = tpu.reciprocal %89 {approx = true} : vector<8x1xf32> -> vector<8x1xf32>
    %91 = vector.broadcast %90 : vector<8x1xf32> to vector<8x8xf32>
    %92 = arith.mulf %87, %91 : vector<8x8xf32>
    %cst_34 = arith.constant dense<0.000000e+00> : vector<8x8xf32>
    %93 = tpu.matmul %92, %75, %cst_34 {dimension_numbers = #tpu.dot_dimension_numbers<[1], [0], [0], [1], [0, 0, 1, 1], [], []>} : vector<8x8xf32>, vector<8x8xf32>, vector<8x8xf32> -> vector<8x8xf32>
    %94 = tpu.concatenate %30, %51, %72, %93 in 1 : vector<8x8xf32>, vector<8x8xf32>, vector<8x8xf32>, vector<8x8xf32> -> vector<8x32xf32>
    %c0_35 = arith.constant 0 : index
    %c0_36 = arith.constant 0 : index
    %c0_37 = arith.constant 0 : index
    %95 = vector.load %arg5[%c0_35, %c0_36, %c0_37] : memref<1x8x32xf32, #tpu.memory_space<vmem>>, vector<1x8x32xf32>
    %96 = vector.shape_cast %95 : vector<1x8x32xf32> to vector<8x32xf32>
    %97 = vector.shape_cast %94 : vector<8x32xf32> to vector<1x8x32xf32>
    tpu.vector_store %arg5[%c0_35, %c0_36, %c0_37], %97 {strides = array<i32>} : memref<1x8x32xf32, #tpu.memory_space<vmem>>, vector<1x8x32xf32>,
    return
  }
  func.func @transform_0(%arg0: i32) -> (i32, i32, i32) {
    %c0_i32 = arith.constant 0 : i32
    %c0_i32_0 = arith.constant 0 : i32
    %c0_i32_1 = arith.constant 0 : i32
    return %arg0, %c0_i32, %c0_i32_0 : i32, i32, i32
  }
  func.func @transform_1(%arg0: i32) -> (i32, i32, i32) {
    %c0_i32 = arith.constant 0 : i32
    %c0_i32_0 = arith.constant 0 : i32
    %c0_i32_1 = arith.constant 0 : i32
    return %arg0, %c0_i32, %c0_i32_0 : i32, i32, i32
  }
  func.func @transform_2(%arg0: i32) -> (i32, i32, i32) {
    %c0_i32 = arith.constant 0 : i32
    %c0_i32_0 = arith.constant 0 : i32
    %c0_i32_1 = arith.constant 0 : i32
    return %arg0, %c0_i32, %c0_i32_0 : i32, i32, i32
  }
  func.func @transform_3(%arg0: i32) -> (i32, i32, i32) {
    %c0_i32 = arith.constant 0 : i32
    %c0_i32_0 = arith.constant 0 : i32
    %c0_i32_1 = arith.constant 0 : i32
    return %arg0, %c0_i32, %c0_i32_0 : i32, i32, i32
  }
  func.func @transform_4(%arg0: i32) -> (i32, i32, i32) {
    %c0_i32 = arith.constant 0 : i32
    %c0_i32_0 = arith.constant 0 : i32
    %c0_i32_1 = arith.constant 0 : i32
    return %arg0, %c0_i32, %c0_i32_0 : i32, i32, i32
  }
}

module attributes {stable_mosaic.version = 11 : i64} {
  func.func @_linear_add_ln_kernel(%arg0: i32, %arg1: i32, %arg2: memref<16x32xf32, #tpu.memory_space<vmem>>, %arg3: memref<32x32xf32, #tpu.memory_space<vmem>>, %arg4: memref<1x32xf32, #tpu.memory_space<vmem>>, %arg5: memref<16x32xf32, #tpu.memory_space<vmem>>, %arg6: memref<1x32xf32, #tpu.memory_space<vmem>>, %arg7: memref<1x32xf32, #tpu.memory_space<vmem>>, %arg8: memref<16x32xf32, #tpu.memory_space<vmem>>, %arg9: memref<16x32xf32, #tpu.memory_space<vmem>>) attributes {dimension_semantics = [#tpu.dimension_semantics<parallel>, #tpu.dimension_semantics<arbitrary>], iteration_bounds = array<i64: 1, 1>, scalar_prefetch = 0 : i64, scratch_operands = 1 : i64, tpu.core_type = #tpu.core_type<tc>, window_params = [{transform_indices = @transform_0, window_bounds = array<i64: 16, 32>}, {transform_indices = @transform_1, window_bounds = array<i64: 32, 32>}, {pipeline_mode = #tpu.pipeline_mode<synchronous>, transform_indices = @transform_2, window_bounds = array<i64: 1, 32>}, {transform_indices = @transform_3, window_bounds = array<i64: 16, 32>}, {pipeline_mode = #tpu.pipeline_mode<synchronous>, transform_indices = @transform_4, window_bounds = array<i64: 1, 32>}, {pipeline_mode = #tpu.pipeline_mode<synchronous>, transform_indices = @transform_5, window_bounds = array<i64: 1, 32>}, {transform_indices = @transform_6, window_bounds = array<i64: 16, 32>}]} {
    %c0_i32 = arith.constant 0 : i32
    %0 = arith.cmpi eq, %arg1, %c0_i32 : i32
    %1 = arith.extui %0 : i1 to i32
    %c0_i32_0 = arith.constant 0 : i32
    %2 = arith.cmpi ne, %1, %c0_i32_0 : i32
    scf.if %2 {
      %cst_10 = arith.constant 0.000000e+00 : f32
      %14 = vector.broadcast %cst_10 : f32 to vector<16x32xf32>
      %c0_11 = arith.constant 0 : index
      %c0_12 = arith.constant 0 : index
      %15 = vector.load %arg9[%c0_11, %c0_12] : memref<16x32xf32, #tpu.memory_space<vmem>>, vector<16x32xf32>
      tpu.vector_store %arg9[%c0_11, %c0_12], %14 {strides = array<i32>} : memref<16x32xf32, #tpu.memory_space<vmem>>, vector<16x32xf32>,
    } else {
    }
    %c0 = arith.constant 0 : index
    %c0_1 = arith.constant 0 : index
    %3 = vector.load %arg9[%c0, %c0_1] : memref<16x32xf32, #tpu.memory_space<vmem>>, vector<16x32xf32>
    %c0_2 = arith.constant 0 : index
    %c0_3 = arith.constant 0 : index
    %4 = vector.load %arg2[%c0_2, %c0_3] : memref<16x32xf32, #tpu.memory_space<vmem>>, vector<16x32xf32>
    %5 = arith.truncf %4 : vector<16x32xf32> to vector<16x32xbf16>
    %c0_4 = arith.constant 0 : index
    %c0_5 = arith.constant 0 : index
    %6 = vector.load %arg3[%c0_4, %c0_5] : memref<32x32xf32, #tpu.memory_space<vmem>>, vector<32x32xf32>
    %7 = arith.truncf %6 : vector<32x32xf32> to vector<32x32xbf16>
    %cst = arith.constant dense<0.000000e+00> : vector<16x32xf32>
    %8 = tpu.matmul %5, %7, %cst {dimension_numbers = #tpu.dot_dimension_numbers<[1], [0], [0], [1], [0, 0, 1, 1], [], []>} : vector<16x32xbf16>, vector<32x32xbf16>, vector<16x32xf32> -> vector<16x32xf32>
    %9 = arith.addf %3, %8 : vector<16x32xf32>
    %c0_6 = arith.constant 0 : index
    %c0_7 = arith.constant 0 : index
    %10 = vector.load %arg9[%c0_6, %c0_7] : memref<16x32xf32, #tpu.memory_space<vmem>>, vector<16x32xf32>
    tpu.vector_store %arg9[%c0_6, %c0_7], %9 {strides = array<i32>} : memref<16x32xf32, #tpu.memory_space<vmem>>, vector<16x32xf32>,
    %c0_i32_8 = arith.constant 0 : i32
    %11 = arith.cmpi eq, %arg1, %c0_i32_8 : i32
    %12 = arith.extui %11 : i1 to i32
    %c0_i32_9 = arith.constant 0 : i32
    %13 = arith.cmpi ne, %12, %c0_i32_9 : i32
    scf.if %13 {
      %c0_10 = arith.constant 0 : index
      %c0_11 = arith.constant 0 : index
      %14 = vector.load %arg9[%c0_10, %c0_11] : memref<16x32xf32, #tpu.memory_space<vmem>>, vector<16x32xf32>
      %c0_12 = arith.constant 0 : index
      %c0_13 = arith.constant 0 : index
      %15 = vector.load %arg4[%c0_12, %c0_13] : memref<1x32xf32, #tpu.memory_space<vmem>>, vector<1x32xf32>
      %16 = vector.broadcast %15 : vector<1x32xf32> to vector<16x32xf32>
      %17 = arith.addf %14, %16 : vector<16x32xf32>
      %c0_14 = arith.constant 0 : index
      %c0_15 = arith.constant 0 : index
      %18 = vector.load %arg5[%c0_14, %c0_15] : memref<16x32xf32, #tpu.memory_space<vmem>>, vector<16x32xf32>
      %19 = arith.addf %17, %18 : vector<16x32xf32>
      %cst_16 = arith.constant dense<0.000000e+00> : vector<16xf32>
      %20 = vector.multi_reduction <add>, %19, %cst_16 [1] : vector<16x32xf32> to vector<16xf32>
      %21 = vector.shape_cast %20 : vector<16xf32> to vector<16x1xf32>
      %cst_17 = arith.constant 3.200000e+01 : f32
      %22 = vector.broadcast %cst_17 : f32 to vector<16x1xf32>
      %23 = arith.divf %21, %22 : vector<16x1xf32>
      %24 = vector.broadcast %23 : vector<16x1xf32> to vector<16x32xf32>
      %25 = arith.subf %19, %24 : vector<16x32xf32>
      %26 = arith.mulf %25, %25 : vector<16x32xf32>
      %cst_18 = arith.constant dense<0.000000e+00> : vector<16xf32>
      %27 = vector.multi_reduction <add>, %26, %cst_18 [1] : vector<16x32xf32> to vector<16xf32>
      %28 = vector.shape_cast %27 : vector<16xf32> to vector<16x1xf32>
      %cst_19 = arith.constant 3.200000e+01 : f32
      %29 = vector.broadcast %cst_19 : f32 to vector<16x1xf32>
      %30 = arith.divf %28, %29 : vector<16x1xf32>
      %31 = vector.broadcast %23 : vector<16x1xf32> to vector<16x32xf32>
      %32 = arith.subf %19, %31 : vector<16x32xf32>
      %cst_20 = arith.constant 9.99999974E-6 : f32
      %33 = vector.broadcast %cst_20 : f32 to vector<16x1xf32>
      %34 = arith.addf %30, %33 : vector<16x1xf32>
      %35 = math.rsqrt %34 : vector<16x1xf32>
      %36 = vector.broadcast %35 : vector<16x1xf32> to vector<16x32xf32>
      %37 = arith.mulf %32, %36 : vector<16x32xf32>
      %c0_21 = arith.constant 0 : index
      %c0_22 = arith.constant 0 : index
      %38 = vector.load %arg6[%c0_21, %c0_22] : memref<1x32xf32, #tpu.memory_space<vmem>>, vector<1x32xf32>
      %39 = vector.broadcast %38 : vector<1x32xf32> to vector<16x32xf32>
      %40 = arith.mulf %37, %39 : vector<16x32xf32>
      %c0_23 = arith.constant 0 : index
      %c0_24 = arith.constant 0 : index
      %41 = vector.load %arg7[%c0_23, %c0_24] : memref<1x32xf32, #tpu.memory_space<vmem>>, vector<1x32xf32>
      %42 = vector.broadcast %41 : vector<1x32xf32> to vector<16x32xf32>
      %43 = arith.addf %40, %42 : vector<16x32xf32>
      %c0_25 = arith.constant 0 : index
      %c0_26 = arith.constant 0 : index
      %44 = vector.load %arg8[%c0_25, %c0_26] : memref<16x32xf32, #tpu.memory_space<vmem>>, vector<16x32xf32>
      tpu.vector_store %arg8[%c0_25, %c0_26], %43 {strides = array<i32>} : memref<16x32xf32, #tpu.memory_space<vmem>>, vector<16x32xf32>,
    } else {
    }
    return
  }
  func.func @transform_0(%arg0: i32, %arg1: i32) -> (i32, i32) {
    %c0_i32 = arith.constant 0 : i32
    return %arg0, %arg1 : i32, i32
  }
  func.func @transform_1(%arg0: i32, %arg1: i32) -> (i32, i32) {
    %c0_i32 = arith.constant 0 : i32
    %c0_i32_0 = arith.constant 0 : i32
    return %arg1, %c0_i32 : i32, i32
  }
  func.func @transform_2(%arg0: i32, %arg1: i32) -> (i32, i32) {
    %c0_i32 = arith.constant 0 : i32
    %c0_i32_0 = arith.constant 0 : i32
    %c0_i32_1 = arith.constant 0 : i32
    return %c0_i32, %c0_i32_0 : i32, i32
  }
  func.func @transform_3(%arg0: i32, %arg1: i32) -> (i32, i32) {
    %c0_i32 = arith.constant 0 : i32
    %c0_i32_0 = arith.constant 0 : i32
    return %arg0, %c0_i32 : i32, i32
  }
  func.func @transform_4(%arg0: i32, %arg1: i32) -> (i32, i32) {
    %c0_i32 = arith.constant 0 : i32
    %c0_i32_0 = arith.constant 0 : i32
    %c0_i32_1 = arith.constant 0 : i32
    return %c0_i32, %c0_i32_0 : i32, i32
  }
  func.func @transform_5(%arg0: i32, %arg1: i32) -> (i32, i32) {
    %c0_i32 = arith.constant 0 : i32
    %c0_i32_0 = arith.constant 0 : i32
    %c0_i32_1 = arith.constant 0 : i32
    return %c0_i32, %c0_i32_0 : i32, i32
  }
  func.func @transform_6(%arg0: i32, %arg1: i32) -> (i32, i32) {
    %c0_i32 = arith.constant 0 : i32
    %c0_i32_0 = arith.constant 0 : i32
    return %arg0, %c0_i32 : i32, i32
  }
}

module attributes {stable_mosaic.version = 11 : i64} {
  func.func @_linear_kernel(%arg0: i32, %arg1: i32, %arg2: i32, %arg3: memref<16x32xf32, #tpu.memory_space<vmem>>, %arg4: memref<32x64xf32, #tpu.memory_space<vmem>>, %arg5: memref<1x64xf32, #tpu.memory_space<vmem>>, %arg6: memref<16x64xf32, #tpu.memory_space<vmem>>, %arg7: memref<16x64xf32, #tpu.memory_space<vmem>>) attributes {dimension_semantics = [#tpu.dimension_semantics<parallel>, #tpu.dimension_semantics<parallel>, #tpu.dimension_semantics<arbitrary>], iteration_bounds = array<i64: 1, 1, 1>, scalar_prefetch = 0 : i64, scratch_operands = 1 : i64, tpu.core_type = #tpu.core_type<tc>, window_params = [{transform_indices = @transform_0, window_bounds = array<i64: 16, 32>}, {transform_indices = @transform_1, window_bounds = array<i64: 32, 64>}, {transform_indices = @transform_2, window_bounds = array<i64: 1, 64>}, {transform_indices = @transform_3, window_bounds = array<i64: 16, 64>}]} {
    %c0_i32 = arith.constant 0 : i32
    %0 = arith.cmpi eq, %arg2, %c0_i32 : i32
    %1 = arith.extui %0 : i1 to i32
    %c0_i32_0 = arith.constant 0 : i32
    %2 = arith.cmpi ne, %1, %c0_i32_0 : i32
    scf.if %2 {
      %cst_10 = arith.constant 0.000000e+00 : f32
      %14 = vector.broadcast %cst_10 : f32 to vector<16x64xf32>
      %c0_11 = arith.constant 0 : index
      %c0_12 = arith.constant 0 : index
      %15 = vector.load %arg7[%c0_11, %c0_12] : memref<16x64xf32, #tpu.memory_space<vmem>>, vector<16x64xf32>
      tpu.vector_store %arg7[%c0_11, %c0_12], %14 {strides = array<i32>} : memref<16x64xf32, #tpu.memory_space<vmem>>, vector<16x64xf32>,
    } else {
    }
    %c0 = arith.constant 0 : index
    %c0_1 = arith.constant 0 : index
    %3 = vector.load %arg7[%c0, %c0_1] : memref<16x64xf32, #tpu.memory_space<vmem>>, vector<16x64xf32>
    %c0_2 = arith.constant 0 : index
    %c0_3 = arith.constant 0 : index
    %4 = vector.load %arg3[%c0_2, %c0_3] : memref<16x32xf32, #tpu.memory_space<vmem>>, vector<16x32xf32>
    %5 = arith.truncf %4 : vector<16x32xf32> to vector<16x32xbf16>
    %c0_4 = arith.constant 0 : index
    %c0_5 = arith.constant 0 : index
    %6 = vector.load %arg4[%c0_4, %c0_5] : memref<32x64xf32, #tpu.memory_space<vmem>>, vector<32x64xf32>
    %7 = arith.truncf %6 : vector<32x64xf32> to vector<32x64xbf16>
    %cst = arith.constant dense<0.000000e+00> : vector<16x64xf32>
    %8 = tpu.matmul %5, %7, %cst {dimension_numbers = #tpu.dot_dimension_numbers<[1], [0], [0], [1], [0, 0, 1, 1], [], []>} : vector<16x32xbf16>, vector<32x64xbf16>, vector<16x64xf32> -> vector<16x64xf32>
    %9 = arith.addf %3, %8 : vector<16x64xf32>
    %c0_6 = arith.constant 0 : index
    %c0_7 = arith.constant 0 : index
    %10 = vector.load %arg7[%c0_6, %c0_7] : memref<16x64xf32, #tpu.memory_space<vmem>>, vector<16x64xf32>
    tpu.vector_store %arg7[%c0_6, %c0_7], %9 {strides = array<i32>} : memref<16x64xf32, #tpu.memory_space<vmem>>, vector<16x64xf32>,
    %c0_i32_8 = arith.constant 0 : i32
    %11 = arith.cmpi eq, %arg2, %c0_i32_8 : i32
    %12 = arith.extui %11 : i1 to i32
    %c0_i32_9 = arith.constant 0 : i32
    %13 = arith.cmpi ne, %12, %c0_i32_9 : i32
    scf.if %13 {
      %c0_10 = arith.constant 0 : index
      %c0_11 = arith.constant 0 : index
      %14 = vector.load %arg7[%c0_10, %c0_11] : memref<16x64xf32, #tpu.memory_space<vmem>>, vector<16x64xf32>
      %c0_12 = arith.constant 0 : index
      %c0_13 = arith.constant 0 : index
      %15 = vector.load %arg5[%c0_12, %c0_13] : memref<1x64xf32, #tpu.memory_space<vmem>>, vector<1x64xf32>
      %16 = vector.broadcast %15 : vector<1x64xf32> to vector<16x64xf32>
      %17 = arith.addf %14, %16 : vector<16x64xf32>
      %cst_14 = arith.constant 0.000000e+00 : f32
      %18 = vector.broadcast %cst_14 : f32 to vector<16x64xf32>
      %19 = arith.maximumf %17, %18 : vector<16x64xf32>
      %c0_15 = arith.constant 0 : index
      %c0_16 = arith.constant 0 : index
      %20 = vector.load %arg6[%c0_15, %c0_16] : memref<16x64xf32, #tpu.memory_space<vmem>>, vector<16x64xf32>
      tpu.vector_store %arg6[%c0_15, %c0_16], %19 {strides = array<i32>} : memref<16x64xf32, #tpu.memory_space<vmem>>, vector<16x64xf32>,
    } else {
    }
    return
  }
  func.func @transform_0(%arg0: i32, %arg1: i32, %arg2: i32) -> (i32, i32) {
    %c0_i32 = arith.constant 0 : i32
    return %arg0, %arg2 : i32, i32
  }
  func.func @transform_1(%arg0: i32, %arg1: i32, %arg2: i32) -> (i32, i32) {
    %c0_i32 = arith.constant 0 : i32
    return %arg2, %arg1 : i32, i32
  }
  func.func @transform_2(%arg0: i32, %arg1: i32, %arg2: i32) -> (i32, i32) {
    %c0_i32 = arith.constant 0 : i32
    %c0_i32_0 = arith.constant 0 : i32
    return %c0_i32, %arg1 : i32, i32
  }
  func.func @transform_3(%arg0: i32, %arg1: i32, %arg2: i32) -> (i32, i32) {
    %c0_i32 = arith.constant 0 : i32
    return %arg0, %arg1 : i32, i32
  }
}

module attributes {stable_mosaic.version = 11 : i64} {
  func.func @_linear_kernel(%arg0: i32, %arg1: i32, %arg2: i32, %arg3: memref<16x32xf32, #tpu.memory_space<vmem>>, %arg4: memref<32x64xf32, #tpu.memory_space<vmem>>, %arg5: memref<1x64xf32, #tpu.memory_space<vmem>>, %arg6: memref<16x64xf32, #tpu.memory_space<vmem>>, %arg7: memref<16x64xf32, #tpu.memory_space<vmem>>) attributes {dimension_semantics = [#tpu.dimension_semantics<parallel>, #tpu.dimension_semantics<parallel>, #tpu.dimension_semantics<arbitrary>], iteration_bounds = array<i64: 1, 1, 1>, scalar_prefetch = 0 : i64, scratch_operands = 1 : i64, tpu.core_type = #tpu.core_type<tc>, window_params = [{transform_indices = @transform_0, window_bounds = array<i64: 16, 32>}, {transform_indices = @transform_1, window_bounds = array<i64: 32, 64>}, {transform_indices = @transform_2, window_bounds = array<i64: 1, 64>}, {transform_indices = @transform_3, window_bounds = array<i64: 16, 64>}]} {
    %c0_i32 = arith.constant 0 : i32
    %0 = arith.cmpi eq, %arg2, %c0_i32 : i32
    %1 = arith.extui %0 : i1 to i32
    %c0_i32_0 = arith.constant 0 : i32
    %2 = arith.cmpi ne, %1, %c0_i32_0 : i32
    scf.if %2 {
      %cst_10 = arith.constant 0.000000e+00 : f32
      %14 = vector.broadcast %cst_10 : f32 to vector<16x64xf32>
      %c0_11 = arith.constant 0 : index
      %c0_12 = arith.constant 0 : index
      %15 = vector.load %arg7[%c0_11, %c0_12] : memref<16x64xf32, #tpu.memory_space<vmem>>, vector<16x64xf32>
      tpu.vector_store %arg7[%c0_11, %c0_12], %14 {strides = array<i32>} : memref<16x64xf32, #tpu.memory_space<vmem>>, vector<16x64xf32>,
    } else {
    }
    %c0 = arith.constant 0 : index
    %c0_1 = arith.constant 0 : index
    %3 = vector.load %arg7[%c0, %c0_1] : memref<16x64xf32, #tpu.memory_space<vmem>>, vector<16x64xf32>
    %c0_2 = arith.constant 0 : index
    %c0_3 = arith.constant 0 : index
    %4 = vector.load %arg3[%c0_2, %c0_3] : memref<16x32xf32, #tpu.memory_space<vmem>>, vector<16x32xf32>
    %5 = arith.truncf %4 : vector<16x32xf32> to vector<16x32xbf16>
    %c0_4 = arith.constant 0 : index
    %c0_5 = arith.constant 0 : index
    %6 = vector.load %arg4[%c0_4, %c0_5] : memref<32x64xf32, #tpu.memory_space<vmem>>, vector<32x64xf32>
    %7 = arith.truncf %6 : vector<32x64xf32> to vector<32x64xbf16>
    %cst = arith.constant dense<0.000000e+00> : vector<16x64xf32>
    %8 = tpu.matmul %5, %7, %cst {dimension_numbers = #tpu.dot_dimension_numbers<[1], [0], [0], [1], [0, 0, 1, 1], [], []>} : vector<16x32xbf16>, vector<32x64xbf16>, vector<16x64xf32> -> vector<16x64xf32>
    %9 = arith.addf %3, %8 : vector<16x64xf32>
    %c0_6 = arith.constant 0 : index
    %c0_7 = arith.constant 0 : index
    %10 = vector.load %arg7[%c0_6, %c0_7] : memref<16x64xf32, #tpu.memory_space<vmem>>, vector<16x64xf32>
    tpu.vector_store %arg7[%c0_6, %c0_7], %9 {strides = array<i32>} : memref<16x64xf32, #tpu.memory_space<vmem>>, vector<16x64xf32>,
    %c0_i32_8 = arith.constant 0 : i32
    %11 = arith.cmpi eq, %arg2, %c0_i32_8 : i32
    %12 = arith.extui %11 : i1 to i32
    %c0_i32_9 = arith.constant 0 : i32
    %13 = arith.cmpi ne, %12, %c0_i32_9 : i32
    scf.if %13 {
      %c0_10 = arith.constant 0 : index
      %c0_11 = arith.constant 0 : index
      %14 = vector.load %arg7[%c0_10, %c0_11] : memref<16x64xf32, #tpu.memory_space<vmem>>, vector<16x64xf32>
      %c0_12 = arith.constant 0 : index
      %c0_13 = arith.constant 0 : index
      %15 = vector.load %arg5[%c0_12, %c0_13] : memref<1x64xf32, #tpu.memory_space<vmem>>, vector<1x64xf32>
      %16 = vector.broadcast %15 : vector<1x64xf32> to vector<16x64xf32>
      %17 = arith.addf %14, %16 : vector<16x64xf32>
      %c0_14 = arith.constant 0 : index
      %c0_15 = arith.constant 0 : index
      %18 = vector.load %arg6[%c0_14, %c0_15] : memref<16x64xf32, #tpu.memory_space<vmem>>, vector<16x64xf32>
      tpu.vector_store %arg6[%c0_14, %c0_15], %17 {strides = array<i32>} : memref<16x64xf32, #tpu.memory_space<vmem>>, vector<16x64xf32>,
    } else {
    }
    return
  }
  func.func @transform_0(%arg0: i32, %arg1: i32, %arg2: i32) -> (i32, i32) {
    %c0_i32 = arith.constant 0 : i32
    return %arg0, %arg2 : i32, i32
  }
  func.func @transform_1(%arg0: i32, %arg1: i32, %arg2: i32) -> (i32, i32) {
    %c0_i32 = arith.constant 0 : i32
    return %arg2, %arg1 : i32, i32
  }
  func.func @transform_2(%arg0: i32, %arg1: i32, %arg2: i32) -> (i32, i32) {
    %c0_i32 = arith.constant 0 : i32
    %c0_i32_0 = arith.constant 0 : i32
    return %c0_i32, %arg1 : i32, i32
  }
  func.func @transform_3(%arg0: i32, %arg1: i32, %arg2: i32) -> (i32, i32) {
    %c0_i32 = arith.constant 0 : i32
    return %arg0, %arg1 : i32, i32
  }
}

module attributes {stable_mosaic.version = 11 : i64} {
  func.func @_linear_kernel(%arg0: i32, %arg1: i32, %arg2: i32, %arg3: memref<16x32xf32, #tpu.memory_space<vmem>>, %arg4: memref<32x32xf32, #tpu.memory_space<vmem>>, %arg5: memref<1x32xf32, #tpu.memory_space<vmem>>, %arg6: memref<16x32xf32, #tpu.memory_space<vmem>>, %arg7: memref<16x32xf32, #tpu.memory_space<vmem>>) attributes {dimension_semantics = [#tpu.dimension_semantics<parallel>, #tpu.dimension_semantics<parallel>, #tpu.dimension_semantics<arbitrary>], iteration_bounds = array<i64: 1, 1, 1>, scalar_prefetch = 0 : i64, scratch_operands = 1 : i64, tpu.core_type = #tpu.core_type<tc>, window_params = [{transform_indices = @transform_0, window_bounds = array<i64: 16, 32>}, {transform_indices = @transform_1, window_bounds = array<i64: 32, 32>}, {transform_indices = @transform_2, window_bounds = array<i64: 1, 32>}, {transform_indices = @transform_3, window_bounds = array<i64: 16, 32>}]} {
    %c0_i32 = arith.constant 0 : i32
    %0 = arith.cmpi eq, %arg2, %c0_i32 : i32
    %1 = arith.extui %0 : i1 to i32
    %c0_i32_0 = arith.constant 0 : i32
    %2 = arith.cmpi ne, %1, %c0_i32_0 : i32
    scf.if %2 {
      %cst_10 = arith.constant 0.000000e+00 : f32
      %14 = vector.broadcast %cst_10 : f32 to vector<16x32xf32>
      %c0_11 = arith.constant 0 : index
      %c0_12 = arith.constant 0 : index
      %15 = vector.load %arg7[%c0_11, %c0_12] : memref<16x32xf32, #tpu.memory_space<vmem>>, vector<16x32xf32>
      tpu.vector_store %arg7[%c0_11, %c0_12], %14 {strides = array<i32>} : memref<16x32xf32, #tpu.memory_space<vmem>>, vector<16x32xf32>,
    } else {
    }
    %c0 = arith.constant 0 : index
    %c0_1 = arith.constant 0 : index
    %3 = vector.load %arg7[%c0, %c0_1] : memref<16x32xf32, #tpu.memory_space<vmem>>, vector<16x32xf32>
    %c0_2 = arith.constant 0 : index
    %c0_3 = arith.constant 0 : index
    %4 = vector.load %arg3[%c0_2, %c0_3] : memref<16x32xf32, #tpu.memory_space<vmem>>, vector<16x32xf32>
    %5 = arith.truncf %4 : vector<16x32xf32> to vector<16x32xbf16>
    %c0_4 = arith.constant 0 : index
    %c0_5 = arith.constant 0 : index
    %6 = vector.load %arg4[%c0_4, %c0_5] : memref<32x32xf32, #tpu.memory_space<vmem>>, vector<32x32xf32>
    %7 = arith.truncf %6 : vector<32x32xf32> to vector<32x32xbf16>
    %cst = arith.constant dense<0.000000e+00> : vector<16x32xf32>
    %8 = tpu.matmul %5, %7, %cst {dimension_numbers = #tpu.dot_dimension_numbers<[1], [0], [0], [1], [0, 0, 1, 1], [], []>} : vector<16x32xbf16>, vector<32x32xbf16>, vector<16x32xf32> -> vector<16x32xf32>
    %9 = arith.addf %3, %8 : vector<16x32xf32>
    %c0_6 = arith.constant 0 : index
    %c0_7 = arith.constant 0 : index
    %10 = vector.load %arg7[%c0_6, %c0_7] : memref<16x32xf32, #tpu.memory_space<vmem>>, vector<16x32xf32>
    tpu.vector_store %arg7[%c0_6, %c0_7], %9 {strides = array<i32>} : memref<16x32xf32, #tpu.memory_space<vmem>>, vector<16x32xf32>,
    %c0_i32_8 = arith.constant 0 : i32
    %11 = arith.cmpi eq, %arg2, %c0_i32_8 : i32
    %12 = arith.extui %11 : i1 to i32
    %c0_i32_9 = arith.constant 0 : i32
    %13 = arith.cmpi ne, %12, %c0_i32_9 : i32
    scf.if %13 {
      %c0_10 = arith.constant 0 : index
      %c0_11 = arith.constant 0 : index
      %14 = vector.load %arg7[%c0_10, %c0_11] : memref<16x32xf32, #tpu.memory_space<vmem>>, vector<16x32xf32>
      %c0_12 = arith.constant 0 : index
      %c0_13 = arith.constant 0 : index
      %15 = vector.load %arg5[%c0_12, %c0_13] : memref<1x32xf32, #tpu.memory_space<vmem>>, vector<1x32xf32>
      %16 = vector.broadcast %15 : vector<1x32xf32> to vector<16x32xf32>
      %17 = arith.addf %14, %16 : vector<16x32xf32>
      %c0_14 = arith.constant 0 : index
      %c0_15 = arith.constant 0 : index
      %18 = vector.load %arg6[%c0_14, %c0_15] : memref<16x32xf32, #tpu.memory_space<vmem>>, vector<16x32xf32>
      tpu.vector_store %arg6[%c0_14, %c0_15], %17 {strides = array<i32>} : memref<16x32xf32, #tpu.memory_space<vmem>>, vector<16x32xf32>,
    } else {
    }
    return
  }
  func.func @transform_0(%arg0: i32, %arg1: i32, %arg2: i32) -> (i32, i32) {
    %c0_i32 = arith.constant 0 : i32
    return %arg0, %arg2 : i32, i32
  }
  func.func @transform_1(%arg0: i32, %arg1: i32, %arg2: i32) -> (i32, i32) {
    %c0_i32 = arith.constant 0 : i32
    return %arg2, %arg1 : i32, i32
  }
  func.func @transform_2(%arg0: i32, %arg1: i32, %arg2: i32) -> (i32, i32) {
    %c0_i32 = arith.constant 0 : i32
    %c0_i32_0 = arith.constant 0 : i32
    return %c0_i32, %arg1 : i32, i32
  }
  func.func @transform_3(%arg0: i32, %arg1: i32, %arg2: i32) -> (i32, i32) {
    %c0_i32 = arith.constant 0 : i32
    return %arg0, %arg1 : i32, i32
  }
}

module attributes {stable_mosaic.version = 11 : i64} {
  func.func @_attention_kernel(%arg0: i32, %arg1: memref<1x8x32xf32, #tpu.memory_space<vmem>>, %arg2: memref<1x8x32xf32, #tpu.memory_space<vmem>>, %arg3: memref<1x8x32xf32, #tpu.memory_space<vmem>>, %arg4: memref<1x1x8xf32, #tpu.memory_space<vmem>>, %arg5: memref<1x8x32xf32, #tpu.memory_space<vmem>>) attributes {dimension_semantics = [#tpu.dimension_semantics<parallel>], iteration_bounds = array<i64: 2>, scalar_prefetch = 0 : i64, scratch_operands = 0 : i64, tpu.core_type = #tpu.core_type<tc>, window_params = [{transform_indices = @transform_0, window_bounds = array<i64: 1, 8, 32>}, {transform_indices = @transform_1, window_bounds = array<i64: 1, 8, 32>}, {transform_indices = @transform_2, window_bounds = array<i64: 1, 8, 32>}, {transform_indices = @transform_3, window_bounds = array<i64: 1, 1, 8>}, {transform_indices = @transform_4, window_bounds = array<i64: 1, 8, 32>}]} {
    %c0 = arith.constant 0 : index
    %c0_0 = arith.constant 0 : index
    %c0_1 = arith.constant 0 : index
    %0 = vector.load %arg1[%c0, %c0_0, %c0_1] : memref<1x8x32xf32, #tpu.memory_space<vmem>>, vector<1x8x32xf32>
    %1 = vector.shape_cast %0 : vector<1x8x32xf32> to vector<8x32xf32>
    %c0_2 = arith.constant 0 : index
    %c0_3 = arith.constant 0 : index
    %c0_4 = arith.constant 0 : index
    %2 = vector.load %arg2[%c0_2, %c0_3, %c0_4] : memref<1x8x32xf32, #tpu.memory_space<vmem>>, vector<1x8x32xf32>
    %3 = vector.shape_cast %2 : vector<1x8x32xf32> to vector<8x32xf32>
    %c0_5 = arith.constant 0 : index
    %c0_6 = arith.constant 0 : index
    %c0_7 = arith.constant 0 : index
    %4 = vector.load %arg3[%c0_5, %c0_6, %c0_7] : memref<1x8x32xf32, #tpu.memory_space<vmem>>, vector<1x8x32xf32>
    %5 = vector.shape_cast %4 : vector<1x8x32xf32> to vector<8x32xf32>
    %c0_8 = arith.constant 0 : index
    %c0_9 = arith.constant 0 : index
    %c0_10 = arith.constant 0 : index
    %6 = vector.load %arg4[%c0_8, %c0_9, %c0_10] : memref<1x1x8xf32, #tpu.memory_space<vmem>>, vector<1x1x8xf32>
    %7 = vector.shape_cast %6 : vector<1x1x8xf32> to vector<1x8xf32>
    %cst = arith.constant 0.000000e+00 : f32
    %8 = vector.broadcast %cst : f32 to vector<1x8xf32>
    %9 = arith.cmpf ogt, %7, %8 : vector<1x8xf32>
    %10 = tpu.iota {dimensions = array<i32: 0>} : vector<8x8xi32>
    %11 = tpu.iota {dimensions = array<i32: 1>} : vector<8x8xi32>
    %12 = arith.cmpi sle, %11, %10 : vector<8x8xi32>
    %13 = vector.broadcast %9 : vector<1x8xi1> to vector<8x8xi1>
    %14 = arith.andi %13, %12 : vector<8x8xi1>
    %15 = vector.extract_strided_slice %1 {offsets = [0, 0], sizes = [8, 8], strides = [1, 1]} : vector<8x32xf32> to vector<8x8xf32>
    %16 = vector.extract_strided_slice %3 {offsets = [0, 0], sizes = [8, 8], strides = [1, 1]} : vector<8x32xf32> to vector<8x8xf32>
    %17 = vector.extract_strided_slice %5 {offsets = [0, 0], sizes = [8, 8], strides = [1, 1]} : vector<8x32xf32> to vector<8x8xf32>
    %cst_11 = arith.constant dense<0.000000e+00> : vector<8x8xf32>
    %18 = tpu.matmul %15, %16, %cst_11 {dimension_numbers = #tpu.dot_dimension_numbers<[1], [1], [0], [0], [0, 0, 1, 0], [], []>} : vector<8x8xf32>, vector<8x8xf32>, vector<8x8xf32> -> vector<8x8xf32>
    %cst_12 = arith.constant 0.353553385 : f32
    %19 = vector.broadcast %cst_12 : f32 to vector<8x8xf32>
    %20 = arith.mulf %18, %19 : vector<8x8xf32>
    %cst_13 = arith.constant -1.000000e+09 : f32
    %21 = vector.broadcast %cst_13 : f32 to vector<8x8xf32>
    %22 = arith.select %14, %20, %21 : vector<8x8xi1>, vector<8x8xf32>
    %cst_14 = arith.constant dense<0xFF800000> : vector<8xf32>
    %23 = vector.multi_reduction <maximumf>, %22, %cst_14 [1] : vector<8x8xf32> to vector<8xf32>
    %24 = vector.shape_cast %23 : vector<8xf32> to vector<8x1xf32>
    %25 = vector.broadcast %24 : vector<8x1xf32> to vector<8x8xf32>
    %26 = arith.subf %22, %25 : vector<8x8xf32>
    %27 = math.exp %26 : vector<8x8xf32>
    %cst_15 = arith.constant dense<0.000000e+00> : vector<8xf32>
    %28 = vector.multi_reduction <add>, %27, %cst_15 [1] : vector<8x8xf32> to vector<8xf32>
    %29 = vector.shape_cast %28 : vector<8xf32> to vector<8x1xf32>
    %30 = tpu.reciprocal %29 {approx = true} : vector<8x1xf32> -> vector<8x1xf32>
    %31 = vector.broadcast %30 : vector<8x1xf32> to vector<8x8xf32>
    %32 = arith.mulf %27, %31 : vector<8x8xf32>
    %cst_16 = arith.constant dense<0.000000e+00> : vector<8x8xf32>
    %33 = tpu.matmul %32, %17, %cst_16 {dimension_numbers = #tpu.dot_dimension_numbers<[1], [0], [0], [1], [0, 0, 1, 1], [], []>} : vector<8x8xf32>, vector<8x8xf32>, vector<8x8xf32> -> vector<8x8xf32>
    %34 = vector.extract_strided_slice %1 {offsets = [0, 8], sizes = [8, 8], strides = [1, 1]} : vector<8x32xf32> to vector<8x8xf32>
    %35 = vector.extract_strided_slice %3 {offsets = [0, 8], sizes = [8, 8], strides = [1, 1]} : vector<8x32xf32> to vector<8x8xf32>
    %36 = vector.extract_strided_slice %5 {offsets = [0, 8], sizes = [8, 8], strides = [1, 1]} : vector<8x32xf32> to vector<8x8xf32>
    %cst_17 = arith.constant dense<0.000000e+00> : vector<8x8xf32>
    %37 = tpu.matmul %34, %35, %cst_17 {dimension_numbers = #tpu.dot_dimension_numbers<[1], [1], [0], [0], [0, 0, 1, 0], [], []>} : vector<8x8xf32>, vector<8x8xf32>, vector<8x8xf32> -> vector<8x8xf32>
    %cst_18 = arith.constant 0.353553385 : f32
    %38 = vector.broadcast %cst_18 : f32 to vector<8x8xf32>
    %39 = arith.mulf %37, %38 : vector<8x8xf32>
    %cst_19 = arith.constant -1.000000e+09 : f32
    %40 = vector.broadcast %cst_19 : f32 to vector<8x8xf32>
    %41 = arith.select %14, %39, %40 : vector<8x8xi1>, vector<8x8xf32>
    %cst_20 = arith.constant dense<0xFF800000> : vector<8xf32>
    %42 = vector.multi_reduction <maximumf>, %41, %cst_20 [1] : vector<8x8xf32> to vector<8xf32>
    %43 = vector.shape_cast %42 : vector<8xf32> to vector<8x1xf32>
    %44 = vector.broadcast %43 : vector<8x1xf32> to vector<8x8xf32>
    %45 = arith.subf %41, %44 : vector<8x8xf32>
    %46 = math.exp %45 : vector<8x8xf32>
    %cst_21 = arith.constant dense<0.000000e+00> : vector<8xf32>
    %47 = vector.multi_reduction <add>, %46, %cst_21 [1] : vector<8x8xf32> to vector<8xf32>
    %48 = vector.shape_cast %47 : vector<8xf32> to vector<8x1xf32>
    %49 = tpu.reciprocal %48 {approx = true} : vector<8x1xf32> -> vector<8x1xf32>
    %50 = vector.broadcast %49 : vector<8x1xf32> to vector<8x8xf32>
    %51 = arith.mulf %46, %50 : vector<8x8xf32>
    %cst_22 = arith.constant dense<0.000000e+00> : vector<8x8xf32>
    %52 = tpu.matmul %51, %36, %cst_22 {dimension_numbers = #tpu.dot_dimension_numbers<[1], [0], [0], [1], [0, 0, 1, 1], [], []>} : vector<8x8xf32>, vector<8x8xf32>, vector<8x8xf32> -> vector<8x8xf32>
    %53 = vector.extract_strided_slice %1 {offsets = [0, 16], sizes = [8, 8], strides = [1, 1]} : vector<8x32xf32> to vector<8x8xf32>
    %54 = vector.extract_strided_slice %3 {offsets = [0, 16], sizes = [8, 8], strides = [1, 1]} : vector<8x32xf32> to vector<8x8xf32>
    %55 = vector.extract_strided_slice %5 {offsets = [0, 16], sizes = [8, 8], strides = [1, 1]} : vector<8x32xf32> to vector<8x8xf32>
    %cst_23 = arith.constant dense<0.000000e+00> : vector<8x8xf32>
    %56 = tpu.matmul %53, %54, %cst_23 {dimension_numbers = #tpu.dot_dimension_numbers<[1], [1], [0], [0], [0, 0, 1, 0], [], []>} : vector<8x8xf32>, vector<8x8xf32>, vector<8x8xf32> -> vector<8x8xf32>
    %cst_24 = arith.constant 0.353553385 : f32
    %57 = vector.broadcast %cst_24 : f32 to vector<8x8xf32>
    %58 = arith.mulf %56, %57 : vector<8x8xf32>
    %cst_25 = arith.constant -1.000000e+09 : f32
    %59 = vector.broadcast %cst_25 : f32 to vector<8x8xf32>
    %60 = arith.select %14, %58, %59 : vector<8x8xi1>, vector<8x8xf32>
    %cst_26 = arith.constant dense<0xFF800000> : vector<8xf32>
    %61 = vector.multi_reduction <maximumf>, %60, %cst_26 [1] : vector<8x8xf32> to vector<8xf32>
    %62 = vector.shape_cast %61 : vector<8xf32> to vector<8x1xf32>
    %63 = vector.broadcast %62 : vector<8x1xf32> to vector<8x8xf32>
    %64 = arith.subf %60, %63 : vector<8x8xf32>
    %65 = math.exp %64 : vector<8x8xf32>
    %cst_27 = arith.constant dense<0.000000e+00> : vector<8xf32>
    %66 = vector.multi_reduction <add>, %65, %cst_27 [1] : vector<8x8xf32> to vector<8xf32>
    %67 = vector.shape_cast %66 : vector<8xf32> to vector<8x1xf32>
    %68 = tpu.reciprocal %67 {approx = true} : vector<8x1xf32> -> vector<8x1xf32>
    %69 = vector.broadcast %68 : vector<8x1xf32> to vector<8x8xf32>
    %70 = arith.mulf %65, %69 : vector<8x8xf32>
    %cst_28 = arith.constant dense<0.000000e+00> : vector<8x8xf32>
    %71 = tpu.matmul %70, %55, %cst_28 {dimension_numbers = #tpu.dot_dimension_numbers<[1], [0], [0], [1], [0, 0, 1, 1], [], []>} : vector<8x8xf32>, vector<8x8xf32>, vector<8x8xf32> -> vector<8x8xf32>
    %72 = vector.extract_strided_slice %1 {offsets = [0, 24], sizes = [8, 8], strides = [1, 1]} : vector<8x32xf32> to vector<8x8xf32>
    %73 = vector.extract_strided_slice %3 {offsets = [0, 24], sizes = [8, 8], strides = [1, 1]} : vector<8x32xf32> to vector<8x8xf32>
    %74 = vector.extract_strided_slice %5 {offsets = [0, 24], sizes = [8, 8], strides = [1, 1]} : vector<8x32xf32> to vector<8x8xf32>
    %cst_29 = arith.constant dense<0.000000e+00> : vector<8x8xf32>
    %75 = tpu.matmul %72, %73, %cst_29 {dimension_numbers = #tpu.dot_dimension_numbers<[1], [1], [0], [0], [0, 0, 1, 0], [], []>} : vector<8x8xf32>, vector<8x8xf32>, vector<8x8xf32> -> vector<8x8xf32>
    %cst_30 = arith.constant 0.353553385 : f32
    %76 = vector.broadcast %cst_30 : f32 to vector<8x8xf32>
    %77 = arith.mulf %75, %76 : vector<8x8xf32>
    %cst_31 = arith.constant -1.000000e+09 : f32
    %78 = vector.broadcast %cst_31 : f32 to vector<8x8xf32>
    %79 = arith.select %14, %77, %78 : vector<8x8xi1>, vector<8x8xf32>
    %cst_32 = arith.constant dense<0xFF800000> : vector<8xf32>
    %80 = vector.multi_reduction <maximumf>, %79, %cst_32 [1] : vector<8x8xf32> to vector<8xf32>
    %81 = vector.shape_cast %80 : vector<8xf32> to vector<8x1xf32>
    %82 = vector.broadcast %81 : vector<8x1xf32> to vector<8x8xf32>
    %83 = arith.subf %79, %82 : vector<8x8xf32>
    %84 = math.exp %83 : vector<8x8xf32>
    %cst_33 = arith.constant dense<0.000000e+00> : vector<8xf32>
    %85 = vector.multi_reduction <add>, %84, %cst_33 [1] : vector<8x8xf32> to vector<8xf32>
    %86 = vector.shape_cast %85 : vector<8xf32> to vector<8x1xf32>
    %87 = tpu.reciprocal %86 {approx = true} : vector<8x1xf32> -> vector<8x1xf32>
    %88 = vector.broadcast %87 : vector<8x1xf32> to vector<8x8xf32>
    %89 = arith.mulf %84, %88 : vector<8x8xf32>
    %cst_34 = arith.constant dense<0.000000e+00> : vector<8x8xf32>
    %90 = tpu.matmul %89, %74, %cst_34 {dimension_numbers = #tpu.dot_dimension_numbers<[1], [0], [0], [1], [0, 0, 1, 1], [], []>} : vector<8x8xf32>, vector<8x8xf32>, vector<8x8xf32> -> vector<8x8xf32>
    %91 = tpu.concatenate %33, %52, %71, %90 in 1 : vector<8x8xf32>, vector<8x8xf32>, vector<8x8xf32>, vector<8x8xf32> -> vector<8x32xf32>
    %c0_35 = arith.constant 0 : index
    %c0_36 = arith.constant 0 : index
    %c0_37 = arith.constant 0 : index
    %92 = vector.load %arg5[%c0_35, %c0_36, %c0_37] : memref<1x8x32xf32, #tpu.memory_space<vmem>>, vector<1x8x32xf32>
    %93 = vector.shape_cast %92 : vector<1x8x32xf32> to vector<8x32xf32>
    %94 = vector.shape_cast %91 : vector<8x32xf32> to vector<1x8x32xf32>
    tpu.vector_store %arg5[%c0_35, %c0_36, %c0_37], %94 {strides = array<i32>} : memref<1x8x32xf32, #tpu.memory_space<vmem>>, vector<1x8x32xf32>,
    return
  }
  func.func @transform_0(%arg0: i32) -> (i32, i32, i32) {
    %c0_i32 = arith.constant 0 : i32
    %c0_i32_0 = arith.constant 0 : i32
    %c0_i32_1 = arith.constant 0 : i32
    return %arg0, %c0_i32, %c0_i32_0 : i32, i32, i32
  }
  func.func @transform_1(%arg0: i32) -> (i32, i32, i32) {
    %c0_i32 = arith.constant 0 : i32
    %c0_i32_0 = arith.constant 0 : i32
    %c0_i32_1 = arith.constant 0 : i32
    return %arg0, %c0_i32, %c0_i32_0 : i32, i32, i32
  }
  func.func @transform_2(%arg0: i32) -> (i32, i32, i32) {
    %c0_i32 = arith.constant 0 : i32
    %c0_i32_0 = arith.constant 0 : i32
    %c0_i32_1 = arith.constant 0 : i32
    return %arg0, %c0_i32, %c0_i32_0 : i32, i32, i32
  }
  func.func @transform_3(%arg0: i32) -> (i32, i32, i32) {
    %c0_i32 = arith.constant 0 : i32
    %c0_i32_0 = arith.constant 0 : i32
    %c0_i32_1 = arith.constant 0 : i32
    return %arg0, %c0_i32, %c0_i32_0 : i32, i32, i32
  }
  func.func @transform_4(%arg0: i32) -> (i32, i32, i32) {
    %c0_i32 = arith.constant 0 : i32
    %c0_i32_0 = arith.constant 0 : i32
    %c0_i32_1 = arith.constant 0 : i32
    return %arg0, %c0_i32, %c0_i32_0 : i32, i32, i32
  }
}

module attributes {stable_mosaic.version = 11 : i64} {
  func.func @_linear_add_ln_kernel(%arg0: i32, %arg1: i32, %arg2: memref<16x64xf32, #tpu.memory_space<vmem>>, %arg3: memref<64x32xf32, #tpu.memory_space<vmem>>, %arg4: memref<1x32xf32, #tpu.memory_space<vmem>>, %arg5: memref<16x32xf32, #tpu.memory_space<vmem>>, %arg6: memref<1x32xf32, #tpu.memory_space<vmem>>, %arg7: memref<1x32xf32, #tpu.memory_space<vmem>>, %arg8: memref<16x32xf32, #tpu.memory_space<vmem>>, %arg9: memref<16x32xf32, #tpu.memory_space<vmem>>) attributes {dimension_semantics = [#tpu.dimension_semantics<parallel>, #tpu.dimension_semantics<arbitrary>], iteration_bounds = array<i64: 1, 1>, scalar_prefetch = 0 : i64, scratch_operands = 1 : i64, tpu.core_type = #tpu.core_type<tc>, window_params = [{transform_indices = @transform_0, window_bounds = array<i64: 16, 64>}, {transform_indices = @transform_1, window_bounds = array<i64: 64, 32>}, {pipeline_mode = #tpu.pipeline_mode<synchronous>, transform_indices = @transform_2, window_bounds = array<i64: 1, 32>}, {transform_indices = @transform_3, window_bounds = array<i64: 16, 32>}, {pipeline_mode = #tpu.pipeline_mode<synchronous>, transform_indices = @transform_4, window_bounds = array<i64: 1, 32>}, {pipeline_mode = #tpu.pipeline_mode<synchronous>, transform_indices = @transform_5, window_bounds = array<i64: 1, 32>}, {transform_indices = @transform_6, window_bounds = array<i64: 16, 32>}]} {
    %c0_i32 = arith.constant 0 : i32
    %0 = arith.cmpi eq, %arg1, %c0_i32 : i32
    %1 = arith.extui %0 : i1 to i32
    %c0_i32_0 = arith.constant 0 : i32
    %2 = arith.cmpi ne, %1, %c0_i32_0 : i32
    scf.if %2 {
      %cst_10 = arith.constant 0.000000e+00 : f32
      %14 = vector.broadcast %cst_10 : f32 to vector<16x32xf32>
      %c0_11 = arith.constant 0 : index
      %c0_12 = arith.constant 0 : index
      %15 = vector.load %arg9[%c0_11, %c0_12] : memref<16x32xf32, #tpu.memory_space<vmem>>, vector<16x32xf32>
      tpu.vector_store %arg9[%c0_11, %c0_12], %14 {strides = array<i32>} : memref<16x32xf32, #tpu.memory_space<vmem>>, vector<16x32xf32>,
    } else {
    }
    %c0 = arith.constant 0 : index
    %c0_1 = arith.constant 0 : index
    %3 = vector.load %arg9[%c0, %c0_1] : memref<16x32xf32, #tpu.memory_space<vmem>>, vector<16x32xf32>
    %c0_2 = arith.constant 0 : index
    %c0_3 = arith.constant 0 : index
    %4 = vector.load %arg2[%c0_2, %c0_3] : memref<16x64xf32, #tpu.memory_space<vmem>>, vector<16x64xf32>
    %5 = arith.truncf %4 : vector<16x64xf32> to vector<16x64xbf16>
    %c0_4 = arith.constant 0 : index
    %c0_5 = arith.constant 0 : index
    %6 = vector.load %arg3[%c0_4, %c0_5] : memref<64x32xf32, #tpu.memory_space<vmem>>, vector<64x32xf32>
    %7 = arith.truncf %6 : vector<64x32xf32> to vector<64x32xbf16>
    %cst = arith.constant dense<0.000000e+00> : vector<16x32xf32>
    %8 = tpu.matmul %5, %7, %cst {dimension_numbers = #tpu.dot_dimension_numbers<[1], [0], [0], [1], [0, 0, 1, 1], [], []>} : vector<16x64xbf16>, vector<64x32xbf16>, vector<16x32xf32> -> vector<16x32xf32>
    %9 = arith.addf %3, %8 : vector<16x32xf32>
    %c0_6 = arith.constant 0 : index
    %c0_7 = arith.constant 0 : index
    %10 = vector.load %arg9[%c0_6, %c0_7] : memref<16x32xf32, #tpu.memory_space<vmem>>, vector<16x32xf32>
    tpu.vector_store %arg9[%c0_6, %c0_7], %9 {strides = array<i32>} : memref<16x32xf32, #tpu.memory_space<vmem>>, vector<16x32xf32>,
    %c0_i32_8 = arith.constant 0 : i32
    %11 = arith.cmpi eq, %arg1, %c0_i32_8 : i32
    %12 = arith.extui %11 : i1 to i32
    %c0_i32_9 = arith.constant 0 : i32
    %13 = arith.cmpi ne, %12, %c0_i32_9 : i32
    scf.if %13 {
      %c0_10 = arith.constant 0 : index
      %c0_11 = arith.constant 0 : index
      %14 = vector.load %arg9[%c0_10, %c0_11] : memref<16x32xf32, #tpu.memory_space<vmem>>, vector<16x32xf32>
      %c0_12 = arith.constant 0 : index
      %c0_13 = arith.constant 0 : index
      %15 = vector.load %arg4[%c0_12, %c0_13] : memref<1x32xf32, #tpu.memory_space<vmem>>, vector<1x32xf32>
      %16 = vector.broadcast %15 : vector<1x32xf32> to vector<16x32xf32>
      %17 = arith.addf %14, %16 : vector<16x32xf32>
      %c0_14 = arith.constant 0 : index
      %c0_15 = arith.constant 0 : index
      %18 = vector.load %arg5[%c0_14, %c0_15] : memref<16x32xf32, #tpu.memory_space<vmem>>, vector<16x32xf32>
      %19 = arith.addf %17, %18 : vector<16x32xf32>
      %cst_16 = arith.constant dense<0.000000e+00> : vector<16xf32>
      %20 = vector.multi_reduction <add>, %19, %cst_16 [1] : vector<16x32xf32> to vector<16xf32>
      %21 = vector.shape_cast %20 : vector<16xf32> to vector<16x1xf32>
      %cst_17 = arith.constant 3.200000e+01 : f32
      %22 = vector.broadcast %cst_17 : f32 to vector<16x1xf32>
      %23 = arith.divf %21, %22 : vector<16x1xf32>
      %24 = vector.broadcast %23 : vector<16x1xf32> to vector<16x32xf32>
      %25 = arith.subf %19, %24 : vector<16x32xf32>
      %26 = arith.mulf %25, %25 : vector<16x32xf32>
      %cst_18 = arith.constant dense<0.000000e+00> : vector<16xf32>
      %27 = vector.multi_reduction <add>, %26, %cst_18 [1] : vector<16x32xf32> to vector<16xf32>
      %28 = vector.shape_cast %27 : vector<16xf32> to vector<16x1xf32>
      %cst_19 = arith.constant 3.200000e+01 : f32
      %29 = vector.broadcast %cst_19 : f32 to vector<16x1xf32>
      %30 = arith.divf %28, %29 : vector<16x1xf32>
      %31 = vector.broadcast %23 : vector<16x1xf32> to vector<16x32xf32>
      %32 = arith.subf %19, %31 : vector<16x32xf32>
      %cst_20 = arith.constant 9.99999974E-6 : f32
      %33 = vector.broadcast %cst_20 : f32 to vector<16x1xf32>
      %34 = arith.addf %30, %33 : vector<16x1xf32>
      %35 = math.rsqrt %34 : vector<16x1xf32>
      %36 = vector.broadcast %35 : vector<16x1xf32> to vector<16x32xf32>
      %37 = arith.mulf %32, %36 : vector<16x32xf32>
      %c0_21 = arith.constant 0 : index
      %c0_22 = arith.constant 0 : index
      %38 = vector.load %arg6[%c0_21, %c0_22] : memref<1x32xf32, #tpu.memory_space<vmem>>, vector<1x32xf32>
      %39 = vector.broadcast %38 : vector<1x32xf32> to vector<16x32xf32>
      %40 = arith.mulf %37, %39 : vector<16x32xf32>
      %c0_23 = arith.constant 0 : index
      %c0_24 = arith.constant 0 : index
      %41 = vector.load %arg7[%c0_23, %c0_24] : memref<1x32xf32, #tpu.memory_space<vmem>>, vector<1x32xf32>
      %42 = vector.broadcast %41 : vector<1x32xf32> to vector<16x32xf32>
      %43 = arith.addf %40, %42 : vector<16x32xf32>
      %c0_25 = arith.constant 0 : index
      %c0_26 = arith.constant 0 : index
      %44 = vector.load %arg8[%c0_25, %c0_26] : memref<16x32xf32, #tpu.memory_space<vmem>>, vector<16x32xf32>
      tpu.vector_store %arg8[%c0_25, %c0_26], %43 {strides = array<i32>} : memref<16x32xf32, #tpu.memory_space<vmem>>, vector<16x32xf32>,
    } else {
    }
    return
  }
  func.func @transform_0(%arg0: i32, %arg1: i32) -> (i32, i32) {
    %c0_i32 = arith.constant 0 : i32
    return %arg0, %arg1 : i32, i32
  }
  func.func @transform_1(%arg0: i32, %arg1: i32) -> (i32, i32) {
    %c0_i32 = arith.constant 0 : i32
    %c0_i32_0 = arith.constant 0 : i32
    return %arg1, %c0_i32 : i32, i32
  }
  func.func @transform_2(%arg0: i32, %arg1: i32) -> (i32, i32) {
    %c0_i32 = arith.constant 0 : i32
    %c0_i32_0 = arith.constant 0 : i32
    %c0_i32_1 = arith.constant 0 : i32
    return %c0_i32, %c0_i32_0 : i32, i32
  }
  func.func @transform_3(%arg0: i32, %arg1: i32) -> (i32, i32) {
    %c0_i32 = arith.constant 0 : i32
    %c0_i32_0 = arith.constant 0 : i32
    return %arg0, %c0_i32 : i32, i32
  }
  func.func @transform_4(%arg0: i32, %arg1: i32) -> (i32, i32) {
    %c0_i32 = arith.constant 0 : i32
    %c0_i32_0 = arith.constant 0 : i32
    %c0_i32_1 = arith.constant 0 : i32
    return %c0_i32, %c0_i32_0 : i32, i32
  }
  func.func @transform_5(%arg0: i32, %arg1: i32) -> (i32, i32) {
    %c0_i32 = arith.constant 0 : i32
    %c0_i32_0 = arith.constant 0 : i32
    %c0_i32_1 = arith.constant 0 : i32
    return %c0_i32, %c0_i32_0 : i32, i32
  }
  func.func @transform_6(%arg0: i32, %arg1: i32) -> (i32, i32) {
    %c0_i32 = arith.constant 0 : i32
    %c0_i32_0 = arith.constant 0 : i32
    return %arg0, %c0_i32 : i32, i32
  }
}

module attributes {stable_mosaic.version = 11 : i64} {
  func.func @_linear_kernel(%arg0: i32, %arg1: i32, %arg2: i32, %arg3: memref<16x32xf32, #tpu.memory_space<vmem>>, %arg4: memref<32x48xf32, #tpu.memory_space<vmem>>, %arg5: memref<1x48xf32, #tpu.memory_space<vmem>>, %arg6: memref<16x48xf32, #tpu.memory_space<vmem>>, %arg7: memref<16x48xf32, #tpu.memory_space<vmem>>) attributes {dimension_semantics = [#tpu.dimension_semantics<parallel>, #tpu.dimension_semantics<parallel>, #tpu.dimension_semantics<arbitrary>], iteration_bounds = array<i64: 1, 1, 1>, scalar_prefetch = 0 : i64, scratch_operands = 1 : i64, tpu.core_type = #tpu.core_type<tc>, window_params = [{transform_indices = @transform_0, window_bounds = array<i64: 16, 32>}, {transform_indices = @transform_1, window_bounds = array<i64: 32, 48>}, {transform_indices = @transform_2, window_bounds = array<i64: 1, 48>}, {transform_indices = @transform_3, window_bounds = array<i64: 16, 48>}]} {
    %c0_i32 = arith.constant 0 : i32
    %0 = arith.cmpi eq, %arg2, %c0_i32 : i32
    %1 = arith.extui %0 : i1 to i32
    %c0_i32_0 = arith.constant 0 : i32
    %2 = arith.cmpi ne, %1, %c0_i32_0 : i32
    scf.if %2 {
      %cst_10 = arith.constant 0.000000e+00 : f32
      %14 = vector.broadcast %cst_10 : f32 to vector<16x48xf32>
      %c0_11 = arith.constant 0 : index
      %c0_12 = arith.constant 0 : index
      %15 = vector.load %arg7[%c0_11, %c0_12] : memref<16x48xf32, #tpu.memory_space<vmem>>, vector<16x48xf32>
      tpu.vector_store %arg7[%c0_11, %c0_12], %14 {strides = array<i32>} : memref<16x48xf32, #tpu.memory_space<vmem>>, vector<16x48xf32>,
    } else {
    }
    %c0 = arith.constant 0 : index
    %c0_1 = arith.constant 0 : index
    %3 = vector.load %arg7[%c0, %c0_1] : memref<16x48xf32, #tpu.memory_space<vmem>>, vector<16x48xf32>
    %c0_2 = arith.constant 0 : index
    %c0_3 = arith.constant 0 : index
    %4 = vector.load %arg3[%c0_2, %c0_3] : memref<16x32xf32, #tpu.memory_space<vmem>>, vector<16x32xf32>
    %5 = arith.truncf %4 : vector<16x32xf32> to vector<16x32xbf16>
    %c0_4 = arith.constant 0 : index
    %c0_5 = arith.constant 0 : index
    %6 = vector.load %arg4[%c0_4, %c0_5] : memref<32x48xf32, #tpu.memory_space<vmem>>, vector<32x48xf32>
    %7 = arith.truncf %6 : vector<32x48xf32> to vector<32x48xbf16>
    %cst = arith.constant dense<0.000000e+00> : vector<16x48xf32>
    %8 = tpu.matmul %5, %7, %cst {dimension_numbers = #tpu.dot_dimension_numbers<[1], [0], [0], [1], [0, 0, 1, 1], [], []>} : vector<16x32xbf16>, vector<32x48xbf16>, vector<16x48xf32> -> vector<16x48xf32>
    %9 = arith.addf %3, %8 : vector<16x48xf32>
    %c0_6 = arith.constant 0 : index
    %c0_7 = arith.constant 0 : index
    %10 = vector.load %arg7[%c0_6, %c0_7] : memref<16x48xf32, #tpu.memory_space<vmem>>, vector<16x48xf32>
    tpu.vector_store %arg7[%c0_6, %c0_7], %9 {strides = array<i32>} : memref<16x48xf32, #tpu.memory_space<vmem>>, vector<16x48xf32>,
    %c0_i32_8 = arith.constant 0 : i32
    %11 = arith.cmpi eq, %arg2, %c0_i32_8 : i32
    %12 = arith.extui %11 : i1 to i32
    %c0_i32_9 = arith.constant 0 : i32
    %13 = arith.cmpi ne, %12, %c0_i32_9 : i32
    scf.if %13 {
      %c0_10 = arith.constant 0 : index
      %c0_11 = arith.constant 0 : index
      %14 = vector.load %arg7[%c0_10, %c0_11] : memref<16x48xf32, #tpu.memory_space<vmem>>, vector<16x48xf32>
      %c0_12 = arith.constant 0 : index
      %c0_13 = arith.constant 0 : index
      %15 = vector.load %arg5[%c0_12, %c0_13] : memref<1x48xf32, #tpu.memory_space<vmem>>, vector<1x48xf32>
      %16 = vector.broadcast %15 : vector<1x48xf32> to vector<16x48xf32>
      %17 = arith.addf %14, %16 : vector<16x48xf32>
      %c0_14 = arith.constant 0 : index
      %c0_15 = arith.constant 0 : index
      %18 = vector.load %arg6[%c0_14, %c0_15] : memref<16x48xf32, #tpu.memory_space<vmem>>, vector<16x48xf32>
      tpu.vector_store %arg6[%c0_14, %c0_15], %17 {strides = array<i32>} : memref<16x48xf32, #tpu.memory_space<vmem>>, vector<16x48xf32>,
    } else {
    }
    return
  }
  func.func @transform_0(%arg0: i32, %arg1: i32, %arg2: i32) -> (i32, i32) {
    %c0_i32 = arith.constant 0 : i32
    return %arg0, %arg2 : i32, i32
  }
  func.func @transform_1(%arg0: i32, %arg1: i32, %arg2: i32) -> (i32, i32) {
    %c0_i32 = arith.constant 0 : i32
    return %arg2, %arg1 : i32, i32
  }
  func.func @transform_2(%arg0: i32, %arg1: i32, %arg2: i32) -> (i32, i32) {
    %c0_i32 = arith.constant 0 : i32
    %c0_i32_0 = arith.constant 0 : i32
    return %c0_i32, %arg1 : i32, i32
  }
  func.func @transform_3(%arg0: i32, %arg1: i32, %arg2: i32) -> (i32, i32) {
    %c0_i32 = arith.constant 0 : i32
    return %arg0, %arg1 : i32, i32
  }
}

</mosaic_0001>

<bundles_post_ra>
// kernel: transformer_forward.29
= control target key start
LH: loop header
LB: loop body
LE: loop exit
PB: predicated region body
PF: predicated region fallthrough
CT: control target
= control target key end

     0   :  { %vm19_vm0 = vcmask 785408   ;;  %v118_v0 = vmov 0.0   ;;  %vm119_vm1 = vmmov 0   ;;  %vm33_vm2 = vcmask 261120   ;;  %s173_s1 = inlined_call_operand.vmem [shape: f32[32,96], index: 1, kind: input, shape index: {}]   ;;  %s174_s0 = inlined_call_operand.vmem [shape: f32[16,32], index: 0, kind: input, shape index: {}]   ;;  %s175_s2 = inlined_call_operand.vmem [shape: f32[1,96], index: 2, kind: input, shape index: {}]   ;;  %s176_s3 = inlined_call_operand.vmem [shape: f32[16,96], index: 3, kind: output, shape index: {}]  }
   0x1   :  { %108 = vmatprep.subr.bf16.mxu0 %v118_v0  ;;  %v27_v1 = vld [vmem:[%s173_s1] sm:$0xff]  ;;  %v28_v2 = vld [vmem:[%s173_s1 + $0x8] sm:$0xff]  ;;  %v29_v3 = vld [vmem:[%s173_s1 + $0x10] sm:$0xff]  ;;  %112 = vmatprep.mubr.msk.bf16.mxu0 %vm119_vm1, %v118_v0  ;;  %20 = vst.msk [vmem:[#allocation2] sm:$0xff] %vm19_vm0, %v118_v0 }
   0x2   :  { %21 = vst.msk [vmem:[#allocation2 + $0x8] sm:$0xff] %vm19_vm0, %v118_v0  ;;  %v31_v4 = vpack.c.bf16 %v28_v2, %v27_v1  ;;  %v30_v5 = vld [vmem:[%s173_s1 + $0x18] sm:$0xff]  ;;  %v24_v7 = vld [vmem:[%s174_s0] sm:$0xff]  ;;  %v25_v8 = vld [vmem:[%s174_s0 + $0x8] sm:$0xff] }
   0x3   :  { %v32_v6 = vpack.c.bf16 %v30_v5, %v29_v3  ;;  %v26_v9 = vpack.c.bf16 %v25_v8, %v24_v7  ;;  %v104_v18 = vld [vmem:[%s175_s2] ss:$0 sm:$0xff] }
   0x4   :  { %109 = vmatpush3.bf16.msra.mxu0 %v31_v4 }
   0x5   :  { %110 = vmatprep.subr.bf16.mxu0 %v118_v0 }
   0x8   :  { %111 = vmatpush3.bf16.msra.mxu0 %v32_v6  ;;  %v22_v10 = vld [vmem:[#allocation2] sm:$0xff] }
   0x9   :  { %v23_v12 = vld [vmem:[#allocation2 + $0x8] sm:$0xff] }
   0xb   :  { %113 = vmatmul.mubr.msk.bf16.vlgmr.msra.gmra.mrb[0].mxu0 %vm33_vm2, %v26_v9 }
  0xde   :  { %v71_v11 = vpop.f32.mrb[0].mxu0 }
  0xdf   :  { %v78_v13 = vadd.f32 %v71_v11, %v22_v10  ;;  %v114_v14 = vpop.f32.mrb[1].mxu0 }
  0xe0   :  { %v74_v15 = vpop.f32.mrb[2].mxu0 }
  0xe1   :  { %81 = vst.msk [vmem:[#allocation2] sm:$0xff] %vm19_vm0, %v78_v13  ;;  %v79_v16 = vadd.f32 %v74_v15, %v23_v12  ;;  %v115_v17 = vpop.f32.mrb[3].mxu0 }
  0xe3   :  { %82 = vst.msk [vmem:[#allocation2 + $0x8] sm:$0xff] %vm19_vm0, %v79_v16 }
  0xe8   :  { %v86_v19 = vld [vmem:[#allocation2] sm:$0xff] }
  0xe9   :  { %v95_v20 = vadd.f32 %v104_v18, %v86_v19 }
  0xea   :  { %v87_v21 = vld [vmem:[#allocation2 + $0x8] sm:$0xff] }
  0xeb   :  { %97 = vst.msk [vmem:[%s176_s3] sm:$0xff] %vm19_vm0, %v95_v20  ;;  %v96_v22 = vadd.f32 %v104_v18, %v87_v21 }
  0xed   :  { %98 = vst.msk [vmem:[%s176_s3 + $0x8] sm:$0xff] %vm19_vm0, %v96_v22 }

// kernel: transformer_forward.31
= control target key start
LH: loop header
LB: loop body
LE: loop exit
PB: predicated region body
PF: predicated region fallthrough
CT: control target
= control target key end

     0   :  { %vm28_vm0 = vcmask 261120   ;;  %v181_v0 = vmov 0.0   ;;  %vm182_vm1 = vmmov 0   ;;  %s268_s1 = inlined_call_operand.vmem [shape: f32[32,32], index: 1, kind: input, shape index: {}]   ;;  %s269_s0 = inlined_call_operand.vmem [shape: f32[16,32], index: 0, kind: input, shape index: {}]   ;;  %s270_s2 = inlined_call_operand.vmem [shape: f32[1,32], index: 2, kind: input, shape index: {}]   ;;  %s271_s3 = inlined_call_operand.vmem [shape: f32[16,32], index: 3, kind: input, shape index: {}]   ;;  %s272_s4 = inlined_call_operand.vmem [shape: f32[1,32], index: 4, kind: input, shape index: {}]   ;;  %s273_s5 = inlined_call_operand.vmem [shape: f32[1,32], index: 5, kind: input, shape index: {}]   ;;  %s274_s6 = inlined_call_operand.vmem [shape: f32[16,32], index: 6, kind: output, shape index: {}]  }
   0x1   :  { %167 = vmatprep.subr.bf16.mxu0 %v181_v0  ;;  %v36_v1 = vld [vmem:[%s268_s1] sm:$0xff]  ;;  %v37_v2 = vld [vmem:[%s268_s1 + $0x8] sm:$0xff]  ;;  %v38_v3 = vld [vmem:[%s268_s1 + $0x10] sm:$0xff]  ;;  %171 = vmatprep.mubr.msk.bf16.mxu0 %vm182_vm1, %v181_v0  ;;  %29 = vst.msk [vmem:[#allocation2] sm:$0xff] %vm28_vm0, %v181_v0 }
   0x2   :  { %30 = vst.msk [vmem:[#allocation2 + $0x8] sm:$0xff] %vm28_vm0, %v181_v0  ;;  %v40_v4 = vpack.c.bf16 %v37_v2, %v36_v1  ;;  %v39_v5 = vld [vmem:[%s268_s1 + $0x18] sm:$0xff]  ;;  %v33_v7 = vld [vmem:[%s269_s0] sm:$0xff]  ;;  %v34_v8 = vld [vmem:[%s269_s0 + $0x8] sm:$0xff] }
   0x3   :  { %v41_v6 = vpack.c.bf16 %v39_v5, %v38_v3  ;;  %v35_v9 = vpack.c.bf16 %v34_v8, %v33_v7  ;;  %v161_v18 = vld [vmem:[%s270_s2] ss:$0 sm:$0xff]  ;;  %v106_v23 = vld [vmem:[%s271_s3 + $0x8] sm:$0xff] }
   0x4   :  { %168 = vmatpush3.bf16.msra.mxu0 %v40_v4  ;;  %v105_v20 = vld [vmem:[%s271_s3] sm:$0xff] }
   0x5   :  { %169 = vmatprep.subr.bf16.mxu0 %v181_v0  ;;  %v162_v46 = vld [vmem:[%s272_s4] ss:$0 sm:$0xff] }
   0x6   :  { %v163_v48 = vld [vmem:[%s273_s5] ss:$0 sm:$0xff] }
   0x8   :  { %170 = vmatpush3.bf16.msra.mxu0 %v41_v6  ;;  %v31_v10 = vld [vmem:[#allocation2] sm:$0xff] }
   0x9   :  { %v32_v12 = vld [vmem:[#allocation2 + $0x8] sm:$0xff] }
   0xb   :  { %172 = vmatmul.mubr.msk.bf16.vlgmr.msra.gmra.mrb[0].mxu0 %vm28_vm0, %v35_v9 }
  0xde   :  { %v80_v11 = vpop.f32.mrb[0].mxu0 }
  0xdf   :  { %v87_v13 = vadd.f32 %v80_v11, %v31_v10  ;;  %v173_v14 = vpop.f32.mrb[1].mxu0 }
  0xe0   :  { %v83_v15 = vpop.f32.mrb[2].mxu0 }
  0xe1   :  { %89 = vst.msk [vmem:[#allocation2] sm:$0xff] %vm28_vm0, %v87_v13  ;;  %v88_v16 = vadd.f32 %v83_v15, %v32_v12  ;;  %v174_v17 = vpop.f32.mrb[3].mxu0 }
  0xe3   :  { %90 = vst.msk [vmem:[#allocation2 + $0x8] sm:$0xff] %vm28_vm0, %v88_v16 }
  0xe8   :  { %v94_v19 = vld [vmem:[#allocation2] sm:$0xff] }
  0xe9   :  { %v103_v21 = vadd.f32 %v161_v18, %v94_v19 }
  0xea   :  { %v95_v22 = vld [vmem:[#allocation2 + $0x8] sm:$0xff] }
  0xeb   :  { %v107_v24 = vadd.f32 %v105_v20, %v103_v21  ;;  %v104_v25 = vadd.f32 %v161_v18, %v95_v22 }
  0xed   :  { %v109_v26 = vsel %vm28_vm0, %v107_v24, 0.0  ;;  %v108_v27 = vadd.f32 %v106_v23, %v104_v25 }
  0xee   :  { %110 = vadd.xlane.f32.xlu0 %v109_v26 }
  0xef   :  { %v112_v28 = vsel %vm28_vm0, %v108_v27, 0.0 }
  0xf2   :  { %113 = vadd.xlane.f32.xlu0 %v112_v28 }
 0x17b   :  { %v111_v29 = vpop.xlane.xlu0 %110 }
 0x17c   :  { %v116_v30 = vmul.f32 0.03125, %v111_v29 }
 0x17e   :  { %v118_v31 = vsub.f32 %v107_v24, %v116_v30 }
 0x17f   :  { %v114_v32 = vpop.xlane.xlu0 %113 }
 0x180   :  { %v117_v33 = vmul.f32 0.03125, %v114_v32  ;;  %v120_v34 = vmul.f32 %v118_v31, %v118_v31 }
 0x182   :  { %v119_v35 = vsub.f32 %v108_v27, %v117_v33  ;;  %v122_v36 = vsel %vm28_vm0, %v120_v34, 0.0 }
 0x183   :  { %123 = vadd.xlane.f32.xlu1 %v122_v36 }
 0x184   :  { %v121_v37 = vmul.f32 %v119_v35, %v119_v35 }
 0x186   :  { %v125_v38 = vsel %vm28_vm0, %v121_v37, 0.0 }
 0x187   :  { %126 = vadd.xlane.f32.xlu1 %v125_v38 }
 0x210   :  { %v124_v39 = vpop.xlane.xlu1 %123 }
 0x211   :  { %v128_v40 = vmul.f32 0.03125, %v124_v39 }
 0x213   :  { %v130_v41 = vadd.f32 1e-05, %v128_v40 }
 0x214   :  { %v127_v42 = vpop.xlane.xlu1 %126 }
 0x215   :  { %177 = vrsqrt.f32 %v130_v41  ;;  %v129_v43 = vmul.f32 0.03125, %v127_v42 }
 0x217   :  { %v131_v44 = vadd.f32 1e-05, %v129_v43 }
 0x219   :  { %179 = vrsqrt.f32 %v131_v44 }
 0x21f   :  { %v178_v45 = vpop.eup %177 }
 0x220   :  { %v134_v47 = vmul.f32 %v178_v45, %v118_v31 }
 0x222   :  { %v143_v49 = vmul.f32 %v162_v46, %v134_v47 }
 0x223   :  { %v180_v50 = vpop.eup %179 }
 0x224   :  { %v152_v51 = vadd.f32 %v163_v48, %v143_v49  ;;  %v135_v52 = vmul.f32 %v180_v50, %v119_v35 }
 0x226   :  { %154 = vst.msk [vmem:[%s274_s6] sm:$0xff] %vm28_vm0, %v152_v51  ;;  %v144_v53 = vmul.f32 %v162_v46, %v135_v52 }
 0x228   :  { %v153_v54 = vadd.f32 %v163_v48, %v144_v53 }
 0x22a   :  { %155 = vst.msk [vmem:[%s274_s6 + $0x8] sm:$0xff] %vm28_vm0, %v153_v54 }

// kernel: transformer_forward.32
= control target key start
LH: loop header
LB: loop body
LE: loop exit
PB: predicated region body
PF: predicated region fallthrough
CT: control target
= control target key end

     0   :  { %vm19_vm0 = vcmask 523264   ;;  %v120_v0 = vmov 0.0   ;;  %vm121_vm1 = vmmov 0   ;;  %vm33_vm2 = vcmask 261120   ;;  %s175_s1 = inlined_call_operand.vmem [shape: f32[32,64], index: 1, kind: input, shape index: {}]   ;;  %s176_s0 = inlined_call_operand.vmem [shape: f32[16,32], index: 0, kind: input, shape index: {}]   ;;  %s177_s2 = inlined_call_operand.vmem [shape: f32[1,64], index: 2, kind: input, shape index: {}]   ;;  %s178_s3 = inlined_call_operand.vmem [shape: f32[16,64], index: 3, kind: output, shape index: {}]  }
   0x1   :  { %110 = vmatprep.subr.bf16.mxu0 %v120_v0  ;;  %v27_v1 = vld [vmem:[%s175_s1] sm:$0xff]  ;;  %v28_v2 = vld [vmem:[%s175_s1 + $0x8] sm:$0xff]  ;;  %v29_v3 = vld [vmem:[%s175_s1 + $0x10] sm:$0xff]  ;;  %114 = vmatprep.mubr.msk.bf16.mxu0 %vm121_vm1, %v120_v0  ;;  %20 = vst.msk [vmem:[#allocation2] sm:$0xff] %vm19_vm0, %v120_v0 }
   0x2   :  { %21 = vst.msk [vmem:[#allocation2 + $0x8] sm:$0xff] %vm19_vm0, %v120_v0  ;;  %v31_v4 = vpack.c.bf16 %v28_v2, %v27_v1  ;;  %v30_v5 = vld [vmem:[%s175_s1 + $0x18] sm:$0xff]  ;;  %v24_v7 = vld [vmem:[%s176_s0] sm:$0xff]  ;;  %v25_v8 = vld [vmem:[%s176_s0 + $0x8] sm:$0xff] }
   0x3   :  { %v32_v6 = vpack.c.bf16 %v30_v5, %v29_v3  ;;  %v26_v9 = vpack.c.bf16 %v25_v8, %v24_v7  ;;  %v106_v18 = vld [vmem:[%s177_s2] ss:$0 sm:$0xff] }
   0x4   :  { %111 = vmatpush3.bf16.msra.mxu0 %v31_v4 }
   0x5   :  { %112 = vmatprep.subr.bf16.mxu0 %v120_v0 }
   0x8   :  { %113 = vmatpush3.bf16.msra.mxu0 %v32_v6  ;;  %v22_v10 = vld [vmem:[#allocation2] sm:$0xff] }
   0x9   :  { %v23_v12 = vld [vmem:[#allocation2 + $0x8] sm:$0xff] }
   0xb   :  { %115 = vmatmul.mubr.msk.bf16.vlgmr.msra.gmra.mrb[0].mxu0 %vm33_vm2, %v26_v9 }
  0xde   :  { %v71_v11 = vpop.f32.mrb[0].mxu0 }
  0xdf   :  { %v78_v13 = vadd.f32 %v71_v11, %v22_v10  ;;  %v116_v14 = vpop.f32.mrb[1].mxu0 }
  0xe0   :  { %v74_v15 = vpop.f32.mrb[2].mxu0 }
  0xe1   :  { %81 = vst.msk [vmem:[#allocation2] sm:$0xff] %vm19_vm0, %v78_v13  ;;  %v79_v16 = vadd.f32 %v74_v15, %v23_v12  ;;  %v117_v17 = vpop.f32.mrb[3].mxu0 }
  0xe3   :  { %82 = vst.msk [vmem:[#allocation2 + $0x8] sm:$0xff] %vm19_vm0, %v79_v16 }
  0xe8   :  { %v86_v19 = vld [vmem:[#allocation2] sm:$0xff] }
  0xe9   :  { %v95_v20 = vadd.f32 %v106_v18, %v86_v19 }
  0xea   :  { %v87_v21 = vld [vmem:[#allocation2 + $0x8] sm:$0xff] }
  0xeb   :  { %v97_v22 = vmax.f32 %v95_v20, 0.0  ;;  %v96_v23 = vadd.f32 %v106_v18, %v87_v21 }
  0xed   :  { %99 = vst.msk [vmem:[%s178_s3] sm:$0xff] %vm19_vm0, %v97_v22  ;;  %v98_v24 = vmax.f32 %v96_v23, 0.0 }
  0xef   :  { %100 = vst.msk [vmem:[%s178_s3 + $0x8] sm:$0xff] %vm19_vm0, %v98_v24 }

// kernel: transformer_forward.30
= control target key start
LH: loop header
LB: loop body
LE: loop exit
PB: predicated region body
PF: predicated region fallthrough
CT: control target
= control target key end

     0   :  { %s1176_s15 = smov 0   ;;  %s1282_s0 = inlined_call_operand.vmem [shape: f32[2,8,32], index: 0, kind: input, shape index: {}]   ;;  %s1283_s1 = inlined_call_operand.vmem [shape: f32[2,8,32], index: 1, kind: input, shape index: {}]   ;;  %s1284_s2 = inlined_call_operand.vmem [shape: f32[2,8,32], index: 2, kind: input, shape index: {}]   ;;  %s1285_s3 = inlined_call_operand.vmem [shape: f32[2,1,8], index: 3, kind: input, shape index: {}]   ;;  %s1286_s4 = inlined_call_operand.vmem [shape: f32[2,8,32], index: 4, kind: output, shape index: {}]  }
   0x1 LB: > { %s1022_s16 = sadd.s32 4294967295, %s1140_s15   ;;  %p1026_p0 = scmp.ge.s32.totalorder %s1140_s15, 1  ;;  %s1140_s15 = sphi %s1176_s15, %s14_s15  }
   0x2   : > { %p187_p1 = scmp.lt.s32.totalorder %s1140_s15, 3 }
   0x4   : > { %p188_p2 = pnand %p1026_p0, %p187_p1 }
   0x5   : > { %p222_p3 = scmp.lt.s32.totalorder (!%p188_p2), %s1022_s16, 1  ;;  %v1142_v0 = vmov (!%p188_p2), 0.0   ;;  %vm1143_vm0 = vmmov (!%p188_p2), 0   ;;  %vm246_vm1 = vcmask (!%p188_p2), 64512   ;;  %v325_v3 = vlaneseq (!%p188_p2)  ;;  %s1145_s27 = smov (!%p188_p2), 120  }
   0x6   : > { %191 = sbr.rel (%p188_p2) target bundleno = 1464 (0x5b8), region = 36  ;;  %1061 = vmatprep.subr.mxu0 (!%p188_p2), %v1142_v0  ;;  %1063 = vmatprep.mubr.msk.f32.mxu0 (!%p188_p2), %vm1143_vm0, %v1142_v0  ;;  %v1144_v7 = vmov (!%p188_p2), 0   ;;  %s1146_s28 = smov (!%p188_p2), 112   ;;  %vm930_vm4 = vcmask (!%p188_p2), 130048   ;;  %vm932_vm5 = vcmask (!%p188_p2), 195584   ;;  %vm934_vm6 = vcmask (!%p188_p2), 261120  }
   0x7   : > { %1066 = vmatprep.subr.mxu1 (!%p188_p2), %v1142_v0  ;;  %1068 = vmatprep.mubr.msk.f32.mxu1 (!%p188_p2), %vm1143_vm0, %v1142_v0  ;;  %v326_v5 = vshrl.u32 (!%p188_p2), %v325_v3, 7  ;;  %s1147_s29 = smov (!%p188_p2), 104   ;;  %s1148_s7 = smov (!%p188_p2), 8  }
   0x8   : > { %s1149_s8 = smov (!%p188_p2), 16   ;;  %s1150_s9 = smov (!%p188_p2), 24  }
   0x9   : > { %v327_v6 = vsub.s32 (!%p188_p2), 0, %v326_v5 }
   0xd   : > { %s1288_s16 = smov (!%p222_p3, %s1022_s16), 1 }
   0xe   : > { %s1190_s17 = sshll.u32 %s1288_s16, 3  ;;  %s236_s26 = scalar_lea.vmem %s1285_s3, %s1288_s16 }
   0xf   : > { %s229_s20 = scalar_lea.vmem %s1283_s1, %s1190_s17  ;;  %s225_s23 = scalar_lea.vmem %s1282_s0, %s1190_s17  ;;  %v244_v4 = vld [vmem:[%s236_s26] sm:$0x1] }
  0x10   : > { %v242_v1 = vld [vmem:[%s229_s20] sm:$0xff]  ;;  %vm245_vm2 = vcmp.gt.f32.partialorder %v244_v4, 0.0  ;;  %s233_s6 = scalar_lea.vmem %s1284_s2, %s1190_s17  ;;  %s240_s12 = scalar_lea.vmem %s1286_s4, %s1190_s17 }
  0x11   : > { %1062 = vmatpush3.xpose.msk.msra.mxu0 %vm246_vm1, %v242_v1  ;;  %v241_v2 = vld [vmem:[%s225_s23] sm:$0xff]  ;;  %v324_v8 = vsel %vm245_vm2, 1, %v1144_v7  ;;  %417 = vrot.lane.b32.xlu1 %v242_v1, %s1145_s27 }
  0x12   : > { %1076 = vmatprep.subr.mxu0 %v1142_v0  ;;  %v1208_v9 = vrot.slane %v324_v8, %v327_v6  ;;  %v1224_v20 = vld [vmem:[%s233_s6] sm:$0xff] }
  0x13   : > { %1067 = vmatpush3.msra.mxu1 %v1224_v20 }
  0x14   : > { %1064 = vmatmul.mubr.msk.f32.vlgmr.msra.gmra.mrb[0].mxu0 %vm246_vm1, %v241_v2  ;;  %vm329_vm3 = vcmp.eq.s32.totalorder %v1208_v9, 1  ;;  %1071 = vmatprep.subr.mxu1 %v1142_v0 }
  0x15   : > { %1078 = vmatprep.mubr.msk.f32.mxu0 %vm1143_vm0, %v1142_v0  ;;  %415 = vrot.lane.b32.xlu1 %v241_v2, %s1145_s27 }
  0x19   : > { %583 = vrot.lane.b32.xlu1 %v241_v2, %s1146_s28 }
  0x1d   : > { %752 = vrot.lane.b32.xlu1 %v242_v1, %s1147_s29 }
  0x21   : > { %750 = vrot.lane.b32.xlu1 %v241_v2, %s1147_s29 }
  0x83   : > { %v418_v21 = vpop.permute.xlu1 %417 }
  0x87   : > { %v416_v23 = vpop.permute.xlu1 %415 }
  0x8b   : > { %v584_v25 = vpop.permute.xlu1 %583 }
  0x8f   : > { %v753_v28 = vpop.permute.xlu1 %752 }
  0x93   : > { %v751_v29 = vpop.permute.xlu1 %750 }
  0xe7   : > { %v319_v10 = vpop.f32.mrb[0].mxu0 }
  0xe8   : > { %v323_v11 = vmul.f32 0.35355338, %v319_v10  ;;  %v1065_v12 = vpop.f32.mrb[1].mxu0 }
  0xea   : > { %v330_v13 = vsel %vm329_vm3, %v323_v11, -1e+09 }
  0xeb   : > { %v331_v14 = vsel %vm246_vm1, %v330_v13, -inf }
  0xec   : > { %332 = vmax.xlane.f32.xlu0 %v331_v14 }
 0x179   : > { %v333_v15 = vpop.xlane.xlu0 %332 }
 0x17a   : > { %v334_v16 = vsub.f32 %v330_v13, %v333_v15 }
 0x17c   : > { %v335_v17 = vmul.f32 1.442695, %v334_v16 }
 0x17e   : > { %1118 = vpow2.f32 %v335_v17 }
 0x188   : > { %v1119_v18 = vpop.eup %1118 }
 0x189   : > { %v337_v19 = vsel %vm246_vm1, %v1119_v18, 0.0 }
 0x18a   : > { %338 = vadd.xlane.f32.xlu0 %v337_v19 }
 0x1a0   : > { %585 = vrot.lane.b32.xlu0 %v242_v1, %s1146_s28 }
 0x217   : > { %v339_v22 = vpop.xlane.xlu0 %338 }
 0x218   : > { %1120 = vrcp.f32 %v339_v22 }
 0x21b   : > { %v586_v27 = vpop.permute.xlu0 %585 }
 0x222   : > { %v1121_v24 = vpop.eup %1120 }
 0x223   : > { %v341_v26 = vmul.f32 %v1121_v24, %v1119_v18 }
 0x225   : > { %1069 = vmatmul.mubr.msk.f32.vlgmr.msra.gmra.mrb[0].mxu1 %vm246_vm1, %v341_v26 }
 0x226   : > { %1072 = vmatpush3.xpose.msk.msra.mxu1 %vm246_vm1, %v418_v21  ;;  %1073 = vmatprep.mubr.msk.f32.mxu1 %vm1143_vm0, %v1142_v0 }
 0x227   : > { %1081 = vmatprep.subr.mxu1 %v1142_v0 }
 0x229   : > { %1074 = vmatmul.mubr.msk.f32.vlgmr.msra.gmra.mrb[2].mxu1 %vm246_vm1, %v416_v23 }
 0x22a   : > { %1082 = vmatpush3.xpose.msk.msra.mxu1 %vm246_vm1, %v586_v27  ;;  %1083 = vmatprep.mubr.msk.f32.mxu1 %vm1143_vm0, %v1142_v0 }
 0x22b   : > { %1091 = vmatprep.subr.mxu1 %v1142_v0 }
 0x22d   : > { %1084 = vmatmul.mubr.msk.f32.vlgmr.msra.gmra.mrb[4].mxu1 %vm246_vm1, %v584_v25 }
 0x22e   : > { %1092 = vmatpush3.xpose.msk.msra.mxu1 %vm246_vm1, %v753_v28  ;;  %1093 = vmatprep.mubr.msk.f32.mxu1 %vm1143_vm0, %v1142_v0 }
 0x231   : > { %1094 = vmatmul.mubr.msk.f32.vlgmr.msra.gmra.mrb[6].mxu1 %vm246_vm1, %v751_v29 }
 0x2f8   : > { %v1244_v30 = vpop.f32.mrb[0].mxu1 }
 0x2f9   : > { %v1070_v31 = vpop.f32.mrb[1].mxu1 }
 0x2fc   : > { %v489_v32 = vpop.f32.mrb[2].mxu1 }
 0x2fd   : > { %v493_v33 = vmul.f32 0.35355338, %v489_v32  ;;  %v1075_v34 = vpop.f32.mrb[3].mxu1 }
 0x2ff   : > { %v494_v35 = vsel %vm329_vm3, %v493_v33, -1e+09 }
 0x300   : > { %v657_v36 = vpop.f32.mrb[4].mxu1  ;;  %v495_v37 = vsel %vm246_vm1, %v494_v35, -inf }
 0x301   : > { %v661_v38 = vmul.f32 0.35355338, %v657_v36  ;;  %496 = vmax.xlane.f32.xlu1 %v495_v37  ;;  %v1085_v39 = vpop.f32.mrb[5].mxu1 }
 0x303   : > { %v662_v40 = vsel %vm329_vm3, %v661_v38, -1e+09 }
 0x304   : > { %v824_v41 = vpop.f32.mrb[6].mxu1  ;;  %v663_v42 = vsel %vm246_vm1, %v662_v40, -inf }
 0x305   : > { %v828_v43 = vmul.f32 0.35355338, %v824_v41  ;;  %664 = vmax.xlane.f32.xlu0 %v663_v42  ;;  %v1095_v44 = vpop.f32.mrb[7].mxu1 }
 0x307   : > { %v829_v45 = vsel %vm329_vm3, %v828_v43, -1e+09 }
 0x308   : > { %v830_v46 = vsel %vm246_vm1, %v829_v45, -inf }
 0x309   : > { %831 = vmax.xlane.f32.xlu1 %v830_v46 }
 0x38e   : > { %v497_v47 = vpop.xlane.xlu1 %496 }
 0x38f   : > { %v498_v48 = vsub.f32 %v494_v35, %v497_v47 }
 0x391   : > { %v499_v49 = vmul.f32 1.442695, %v498_v48 }
 0x392   : > { %v665_v50 = vpop.xlane.xlu0 %664 }
 0x393   : > { %1122 = vpow2.f32 %v499_v49  ;;  %v666_v51 = vsub.f32 %v662_v40, %v665_v50 }
 0x395   : > { %v667_v52 = vmul.f32 1.442695, %v666_v51 }
 0x396   : > { %v832_v57 = vpop.xlane.xlu1 %831 }
 0x397   : > { %1124 = vpow2.f32 %v667_v52  ;;  %v833_v58 = vsub.f32 %v829_v45, %v832_v57 }
 0x399   : > { %v834_v59 = vmul.f32 1.442695, %v833_v58 }
 0x39b   : > { %1126 = vpow2.f32 %v834_v59 }
 0x39d   : > { %v1123_v53 = vpop.eup %1122 }
 0x39e   : > { %v501_v54 = vsel %vm246_vm1, %v1123_v53, 0.0 }
 0x39f   : > { %502 = vadd.xlane.f32.xlu1 %v501_v54 }
 0x3a1   : > { %v1125_v55 = vpop.eup %1124 }
 0x3a2   : > { %v669_v56 = vsel %vm246_vm1, %v1125_v55, 0.0 }
 0x3a3   : > { %670 = vadd.xlane.f32.xlu0 %v669_v56 }
 0x3a5   : > { %v1127_v60 = vpop.eup %1126 }
 0x3a6   : > { %v836_v61 = vsel %vm246_vm1, %v1127_v60, 0.0 }
 0x3b0   : > { %674 = vrot.lane.b32.xlu1 %v1224_v20, %s1146_s28 }
 0x3b9   : > { %507 = vrot.lane.b32.xlu0 %v1224_v20, %s1145_s27 }
 0x3d4   : > { %837 = vadd.xlane.f32.xlu1 %v836_v61 }
 0x3e5   : > { %841 = vrot.lane.b32.xlu1 %v1224_v20, %s1147_s29 }
 0x42c   : > { %v503_v62 = vpop.xlane.xlu1 %502 }
 0x42d   : > { %1128 = vrcp.f32 %v503_v62 }
 0x430   : > { %v671_v63 = vpop.xlane.xlu0 %670  ;;  %v675_v4 = vpop.permute.xlu1 %674 }
 0x431   : > { %1130 = vrcp.f32 %v671_v63 }
 0x434   : > { %v508_v1 = vpop.permute.xlu0 %507 }
 0x435   : > { %1077 = vmatpush3.msra.mxu0 %v508_v1 }
 0x436   : > { %1086 = vmatprep.subr.mxu0 %v1142_v0 }
 0x437   : > { %v1129_v2 = vpop.eup %1128 }
 0x438   : > { %v505_v3 = vmul.f32 %v1129_v2, %v1123_v53 }
 0x43a   : > { %1079 = vmatmul.mubr.msk.f32.vlgmr.msra.gmra.mrb[2].mxu0 %vm246_vm1, %v505_v3 }
 0x43b   : > { %v1131_v5 = vpop.eup %1130  ;;  %1087 = vmatpush3.msra.mxu0 %v675_v4  ;;  %1088 = vmatprep.mubr.msk.f32.mxu0 %vm1143_vm0, %v1142_v0 }
 0x43c   : > { %v673_v6 = vmul.f32 %v1131_v5, %v1125_v55  ;;  %1096 = vmatprep.subr.mxu0 %v1142_v0 }
 0x43e   : > { %1089 = vmatmul.mubr.msk.f32.vlgmr.msra.gmra.mrb[4].mxu0 %vm246_vm1, %v673_v6 }
 0x43f   : > { %1098 = vmatprep.mubr.msk.f32.mxu0 %vm1143_vm0, %v1142_v0 }
 0x461   : > { %v838_v7 = vpop.xlane.xlu1 %837 }
 0x462   : > { %1132 = vrcp.f32 %v838_v7 }
 0x465   : > { %v842_v8 = vpop.permute.xlu1 %841 }
 0x466   : > { %1097 = vmatpush3.msra.mxu0 %v842_v8 }
 0x46c   : > { %v1133_v9 = vpop.eup %1132 }
 0x46d   : > { %v840_v10 = vmul.f32 %v1133_v9, %v1127_v60 }
 0x46f   : > { %1099 = vmatmul.mubr.msk.f32.vlgmr.msra.gmra.mrb[6].mxu0 %vm246_vm1, %v840_v10 }
 0x50d   : > { %v579_v11 = vpop.f32.mrb[2].mxu0 }
 0x50e   : > { %918 = vrot.lane.b32.xlu0 %v579_v11, %s1148_s7  ;;  %v1080_v12 = vpop.f32.mrb[3].mxu0 }
 0x511   : > { %v746_v13 = vpop.f32.mrb[4].mxu0 }
 0x512   : > { %922 = vrot.lane.b32.xlu1 %v746_v13, %s1149_s8  ;;  %v1090_v14 = vpop.f32.mrb[5].mxu0 }
 0x542   : > { %v913_v15 = vpop.f32.mrb[6].mxu0 }
 0x543   : > { %926 = vrot.lane.b32.xlu0 %v913_v15, %s1150_s9  ;;  %v1100_v0 = vpop.f32.mrb[7].mxu0 }
 0x580   : > { %v919_v16 = vpop.permute.xlu0 %918 }
 0x581   : > { %v929_v18 = vsel %vm246_vm1, %v1244_v30, %v919_v16 }
 0x584   : > { %v923_v17 = vpop.permute.xlu1 %922 }
 0x585   : > { %v931_v19 = vsel %vm930_vm4, %v929_v18, %v923_v17 }
 0x5b5   : > { %v927_v20 = vpop.permute.xlu0 %926 }
 0x5b6   : > { %v933_v21 = vsel %vm932_vm5, %v931_v19, %v927_v20 }
 0x5b7   : > { %935 = vst.msk [vmem:[%s240_s12] sm:$0xff] %vm934_vm6, %v933_v21 }
 0x5b8 PF: > { %s14_s15 = sadd.s32 1, %s1140_s15  }
 0x5b9   : > { %p11_p4 = scmp.ge.s32.totalorder %s14_s15, 4  }
 0x5bb   :  { %13 = sbr.rel (!%p11_p4) target bundleno = 1 (0x1), region = 75 }

// kernel: transformer_forward.43
= control target key start
LH: loop header
LB: loop body
LE: loop exit
PB: predicated region body
PF: predicated region fallthrough
CT: control target
= control target key end

     0   :  { %vm19_vm0 = vcmask 523264   ;;  %v118_v0 = vmov 0.0   ;;  %vm119_vm1 = vmmov 0   ;;  %vm33_vm2 = vcmask 261120   ;;  %s173_s1 = inlined_call_operand.vmem [shape: f32[32,64], index: 1, kind: input, shape index: {}]   ;;  %s174_s0 = inlined_call_operand.vmem [shape: f32[16,32], index: 0, kind: input, shape index: {}]   ;;  %s175_s2 = inlined_call_operand.vmem [shape: f32[1,64], index: 2, kind: input, shape index: {}]   ;;  %s176_s3 = inlined_call_operand.vmem [shape: f32[16,64], index: 3, kind: output, shape index: {}]  }
   0x1   :  { %108 = vmatprep.subr.bf16.mxu0 %v118_v0  ;;  %v27_v1 = vld [vmem:[%s173_s1] sm:$0xff]  ;;  %v28_v2 = vld [vmem:[%s173_s1 + $0x8] sm:$0xff]  ;;  %v29_v3 = vld [vmem:[%s173_s1 + $0x10] sm:$0xff]  ;;  %112 = vmatprep.mubr.msk.bf16.mxu0 %vm119_vm1, %v118_v0  ;;  %20 = vst.msk [vmem:[#allocation2] sm:$0xff] %vm19_vm0, %v118_v0 }
   0x2   :  { %21 = vst.msk [vmem:[#allocation2 + $0x8] sm:$0xff] %vm19_vm0, %v118_v0  ;;  %v31_v4 = vpack.c.bf16 %v28_v2, %v27_v1  ;;  %v30_v5 = vld [vmem:[%s173_s1 + $0x18] sm:$0xff]  ;;  %v24_v7 = vld [vmem:[%s174_s0] sm:$0xff]  ;;  %v25_v8 = vld [vmem:[%s174_s0 + $0x8] sm:$0xff] }
   0x3   :  { %v32_v6 = vpack.c.bf16 %v30_v5, %v29_v3  ;;  %v26_v9 = vpack.c.bf16 %v25_v8, %v24_v7  ;;  %v104_v18 = vld [vmem:[%s175_s2] ss:$0 sm:$0xff] }
   0x4   :  { %109 = vmatpush3.bf16.msra.mxu0 %v31_v4 }
   0x5   :  { %110 = vmatprep.subr.bf16.mxu0 %v118_v0 }
   0x8   :  { %111 = vmatpush3.bf16.msra.mxu0 %v32_v6  ;;  %v22_v10 = vld [vmem:[#allocation2] sm:$0xff] }
   0x9   :  { %v23_v12 = vld [vmem:[#allocation2 + $0x8] sm:$0xff] }
   0xb   :  { %113 = vmatmul.mubr.msk.bf16.vlgmr.msra.gmra.mrb[0].mxu0 %vm33_vm2, %v26_v9 }
  0xde   :  { %v71_v11 = vpop.f32.mrb[0].mxu0 }
  0xdf   :  { %v78_v13 = vadd.f32 %v71_v11, %v22_v10  ;;  %v114_v14 = vpop.f32.mrb[1].mxu0 }
  0xe0   :  { %v74_v15 = vpop.f32.mrb[2].mxu0 }
  0xe1   :  { %81 = vst.msk [vmem:[#allocation2] sm:$0xff] %vm19_vm0, %v78_v13  ;;  %v79_v16 = vadd.f32 %v74_v15, %v23_v12  ;;  %v115_v17 = vpop.f32.mrb[3].mxu0 }
  0xe3   :  { %82 = vst.msk [vmem:[#allocation2 + $0x8] sm:$0xff] %vm19_vm0, %v79_v16 }
  0xe8   :  { %v86_v19 = vld [vmem:[#allocation2] sm:$0xff] }
  0xe9   :  { %v95_v20 = vadd.f32 %v104_v18, %v86_v19 }
  0xea   :  { %v87_v21 = vld [vmem:[#allocation2 + $0x8] sm:$0xff] }
  0xeb   :  { %97 = vst.msk [vmem:[%s176_s3] sm:$0xff] %vm19_vm0, %v95_v20  ;;  %v96_v22 = vadd.f32 %v104_v18, %v87_v21 }
  0xed   :  { %98 = vst.msk [vmem:[%s176_s3 + $0x8] sm:$0xff] %vm19_vm0, %v96_v22 }

// kernel: transformer_forward.42
= control target key start
LH: loop header
LB: loop body
LE: loop exit
PB: predicated region body
PF: predicated region fallthrough
CT: control target
= control target key end

     0   :  { %vm19_vm0 = vcmask 261120   ;;  %v117_v0 = vmov 0.0   ;;  %vm118_vm1 = vmmov 0   ;;  %s173_s1 = inlined_call_operand.vmem [shape: f32[32,32], index: 1, kind: input, shape index: {}]   ;;  %s174_s0 = inlined_call_operand.vmem [shape: f32[16,32], index: 0, kind: input, shape index: {}]   ;;  %s175_s2 = inlined_call_operand.vmem [shape: f32[1,32], index: 2, kind: input, shape index: {}]   ;;  %s176_s3 = inlined_call_operand.vmem [shape: f32[16,32], index: 3, kind: output, shape index: {}]  }
   0x1   :  { %107 = vmatprep.subr.bf16.mxu0 %v117_v0  ;;  %v27_v1 = vld [vmem:[%s173_s1] sm:$0xff]  ;;  %v28_v2 = vld [vmem:[%s173_s1 + $0x8] sm:$0xff]  ;;  %v29_v3 = vld [vmem:[%s173_s1 + $0x10] sm:$0xff]  ;;  %111 = vmatprep.mubr.msk.bf16.mxu0 %vm118_vm1, %v117_v0  ;;  %20 = vst.msk [vmem:[#allocation2] sm:$0xff] %vm19_vm0, %v117_v0 }
   0x2   :  { %21 = vst.msk [vmem:[#allocation2 + $0x8] sm:$0xff] %vm19_vm0, %v117_v0  ;;  %v31_v4 = vpack.c.bf16 %v28_v2, %v27_v1  ;;  %v30_v5 = vld [vmem:[%s173_s1 + $0x18] sm:$0xff]  ;;  %v24_v7 = vld [vmem:[%s174_s0] sm:$0xff]  ;;  %v25_v8 = vld [vmem:[%s174_s0 + $0x8] sm:$0xff] }
   0x3   :  { %v32_v6 = vpack.c.bf16 %v30_v5, %v29_v3  ;;  %v26_v9 = vpack.c.bf16 %v25_v8, %v24_v7  ;;  %v103_v18 = vld [vmem:[%s175_s2] ss:$0 sm:$0xff] }
   0x4   :  { %108 = vmatpush3.bf16.msra.mxu0 %v31_v4 }
   0x5   :  { %109 = vmatprep.subr.bf16.mxu0 %v117_v0 }
   0x8   :  { %110 = vmatpush3.bf16.msra.mxu0 %v32_v6  ;;  %v22_v10 = vld [vmem:[#allocation2] sm:$0xff] }
   0x9   :  { %v23_v12 = vld [vmem:[#allocation2 + $0x8] sm:$0xff] }
   0xb   :  { %112 = vmatmul.mubr.msk.bf16.vlgmr.msra.gmra.mrb[0].mxu0 %vm19_vm0, %v26_v9 }
  0xde   :  { %v71_v11 = vpop.f32.mrb[0].mxu0 }
  0xdf   :  { %v78_v13 = vadd.f32 %v71_v11, %v22_v10  ;;  %v113_v14 = vpop.f32.mrb[1].mxu0 }
  0xe0   :  { %v74_v15 = vpop.f32.mrb[2].mxu0 }
  0xe1   :  { %80 = vst.msk [vmem:[#allocation2] sm:$0xff] %vm19_vm0, %v78_v13  ;;  %v79_v16 = vadd.f32 %v74_v15, %v23_v12  ;;  %v114_v17 = vpop.f32.mrb[3].mxu0 }
  0xe3   :  { %81 = vst.msk [vmem:[#allocation2 + $0x8] sm:$0xff] %vm19_vm0, %v79_v16 }
  0xe8   :  { %v85_v19 = vld [vmem:[#allocation2] sm:$0xff] }
  0xe9   :  { %v94_v20 = vadd.f32 %v103_v18, %v85_v19 }
  0xea   :  { %v86_v21 = vld [vmem:[#allocation2 + $0x8] sm:$0xff] }
  0xeb   :  { %96 = vst.msk [vmem:[%s176_s3] sm:$0xff] %vm19_vm0, %v94_v20  ;;  %v95_v22 = vadd.f32 %v103_v18, %v86_v21 }
  0xed   :  { %97 = vst.msk [vmem:[%s176_s3 + $0x8] sm:$0xff] %vm19_vm0, %v95_v22 }

// kernel: transformer_forward.33
= control target key start
LH: loop header
LB: loop body
LE: loop exit
PB: predicated region body
PF: predicated region fallthrough
CT: control target
= control target key end

     0   :  { %vm28_vm0 = vcmask 261120   ;;  %v194_v0 = vmov 0.0   ;;  %vm195_vm1 = vmmov 0   ;;  %vm48_vm2 = vcmask 523264   ;;  %s292_s1 = inlined_call_operand.vmem [shape: f32[64,32], index: 1, kind: input, shape index: {}]   ;;  %s293_s0 = inlined_call_operand.vmem [shape: f32[16,64], index: 0, kind: input, shape index: {}]   ;;  %s294_s2 = inlined_call_operand.vmem [shape: f32[1,32], index: 2, kind: input, shape index: {}]   ;;  %s295_s3 = inlined_call_operand.vmem [shape: f32[16,32], index: 3, kind: input, shape index: {}]   ;;  %s296_s4 = inlined_call_operand.vmem [shape: f32[1,32], index: 4, kind: input, shape index: {}]   ;;  %s297_s5 = inlined_call_operand.vmem [shape: f32[1,32], index: 5, kind: input, shape index: {}]   ;;  %s298_s6 = inlined_call_operand.vmem [shape: f32[16,32], index: 6, kind: output, shape index: {}]  }
   0x1   :  { %176 = vmatprep.subr.bf16.mxu0 %v194_v0  ;;  %v36_v1 = vld [vmem:[%s292_s1] sm:$0xff]  ;;  %v37_v2 = vld [vmem:[%s292_s1 + $0x8] sm:$0xff]  ;;  %v38_v3 = vld [vmem:[%s292_s1 + $0x10] sm:$0xff]  ;;  %184 = vmatprep.mubr.msk.bf16.mxu0 %vm195_vm1, %v194_v0  ;;  %29 = vst.msk [vmem:[#allocation2] sm:$0xff] %vm28_vm0, %v194_v0 }
   0x2   :  { %30 = vst.msk [vmem:[#allocation2 + $0x8] sm:$0xff] %vm28_vm0, %v194_v0  ;;  %v44_v4 = vpack.c.bf16 %v37_v2, %v36_v1  ;;  %v39_v5 = vld [vmem:[%s292_s1 + $0x18] sm:$0xff]  ;;  %v40_v7 = vld [vmem:[%s292_s1 + $0x20] sm:$0xff]  ;;  %v41_v8 = vld [vmem:[%s292_s1 + $0x28] sm:$0xff] }
   0x3   :  { %v45_v6 = vpack.c.bf16 %v39_v5, %v38_v3  ;;  %v46_v9 = vpack.c.bf16 %v41_v8, %v40_v7  ;;  %v42_v10 = vld [vmem:[%s292_s1 + $0x30] sm:$0xff]  ;;  %v43_v11 = vld [vmem:[%s292_s1 + $0x38] sm:$0xff]  ;;  %v33_v13 = vld [vmem:[%s293_s0] sm:$0xff] }
   0x4   :  { %177 = vmatpush3.bf16.msra.mxu0 %v44_v4  ;;  %v47_v12 = vpack.c.bf16 %v43_v11, %v42_v10  ;;  %v34_v14 = vld [vmem:[%s293_s0 + $0x8] sm:$0xff]  ;;  %v168_v24 = vld [vmem:[%s294_s2] ss:$0 sm:$0xff] }
   0x5   :  { %178 = vmatprep.subr.bf16.mxu0 %v194_v0  ;;  %v35_v15 = vpack.c.bf16 %v34_v14, %v33_v13  ;;  %v112_v26 = vld [vmem:[%s295_s3] sm:$0xff]  ;;  %v113_v29 = vld [vmem:[%s295_s3 + $0x8] sm:$0xff] }
   0x6   :  { %v169_v52 = vld [vmem:[%s296_s4] ss:$0 sm:$0xff] }
   0x7   :  { %v170_v54 = vld [vmem:[%s297_s5] ss:$0 sm:$0xff] }
   0x8   :  { %179 = vmatpush3.bf16.msra.mxu0 %v45_v6  ;;  %v31_v16 = vld [vmem:[#allocation2] sm:$0xff] }
   0x9   :  { %180 = vmatprep.subr.bf16.mxu0 %v194_v0  ;;  %v32_v18 = vld [vmem:[#allocation2 + $0x8] sm:$0xff] }
   0xc   :  { %181 = vmatpush3.bf16.msra.mxu0 %v46_v9 }
   0xd   :  { %182 = vmatprep.subr.bf16.mxu0 %v194_v0 }
  0x10   :  { %183 = vmatpush3.bf16.msra.mxu0 %v47_v12 }
  0x13   :  { %185 = vmatmul.mubr.msk.bf16.vlgmr.msra.gmra.mrb[0].mxu0 %vm48_vm2, %v35_v15 }
  0xe6   :  { %v86_v17 = vpop.f32.mrb[0].mxu0 }
  0xe7   :  { %v93_v19 = vadd.f32 %v86_v17, %v31_v16  ;;  %v186_v20 = vpop.f32.mrb[1].mxu0 }
  0xe8   :  { %v89_v21 = vpop.f32.mrb[2].mxu0 }
  0xe9   :  { %96 = vst.msk [vmem:[#allocation2] sm:$0xff] %vm28_vm0, %v93_v19  ;;  %v94_v22 = vadd.f32 %v89_v21, %v32_v18  ;;  %v187_v23 = vpop.f32.mrb[3].mxu0 }
  0xeb   :  { %97 = vst.msk [vmem:[#allocation2 + $0x8] sm:$0xff] %vm28_vm0, %v94_v22 }
  0xf0   :  { %v101_v25 = vld [vmem:[#allocation2] sm:$0xff] }
  0xf1   :  { %v110_v27 = vadd.f32 %v168_v24, %v101_v25 }
  0xf2   :  { %v102_v28 = vld [vmem:[#allocation2 + $0x8] sm:$0xff] }
  0xf3   :  { %v114_v30 = vadd.f32 %v112_v26, %v110_v27  ;;  %v111_v31 = vadd.f32 %v168_v24, %v102_v28 }
  0xf5   :  { %v116_v32 = vsel %vm28_vm0, %v114_v30, 0.0  ;;  %v115_v33 = vadd.f32 %v113_v29, %v111_v31 }
  0xf6   :  { %117 = vadd.xlane.f32.xlu0 %v116_v32 }
  0xf7   :  { %v119_v34 = vsel %vm28_vm0, %v115_v33, 0.0 }
  0xfa   :  { %120 = vadd.xlane.f32.xlu0 %v119_v34 }
 0x183   :  { %v118_v35 = vpop.xlane.xlu0 %117 }
 0x184   :  { %v123_v36 = vmul.f32 0.03125, %v118_v35 }
 0x186   :  { %v125_v37 = vsub.f32 %v114_v30, %v123_v36 }
 0x187   :  { %v121_v38 = vpop.xlane.xlu0 %120 }
 0x188   :  { %v124_v39 = vmul.f32 0.03125, %v121_v38  ;;  %v127_v40 = vmul.f32 %v125_v37, %v125_v37 }
 0x18a   :  { %v126_v41 = vsub.f32 %v115_v33, %v124_v39  ;;  %v129_v42 = vsel %vm28_vm0, %v127_v40, 0.0 }
 0x18b   :  { %130 = vadd.xlane.f32.xlu1 %v129_v42 }
 0x18c   :  { %v128_v43 = vmul.f32 %v126_v41, %v126_v41 }
 0x18e   :  { %v132_v44 = vsel %vm28_vm0, %v128_v43, 0.0 }
 0x18f   :  { %133 = vadd.xlane.f32.xlu1 %v132_v44 }
 0x218   :  { %v131_v45 = vpop.xlane.xlu1 %130 }
 0x219   :  { %v135_v46 = vmul.f32 0.03125, %v131_v45 }
 0x21b   :  { %v137_v47 = vadd.f32 1e-05, %v135_v46 }
 0x21c   :  { %v134_v48 = vpop.xlane.xlu1 %133 }
 0x21d   :  { %190 = vrsqrt.f32 %v137_v47  ;;  %v136_v49 = vmul.f32 0.03125, %v134_v48 }
 0x21f   :  { %v138_v50 = vadd.f32 1e-05, %v136_v49 }
 0x221   :  { %192 = vrsqrt.f32 %v138_v50 }
 0x227   :  { %v191_v51 = vpop.eup %190 }
 0x228   :  { %v141_v53 = vmul.f32 %v191_v51, %v125_v37 }
 0x22a   :  { %v150_v55 = vmul.f32 %v169_v52, %v141_v53 }
 0x22b   :  { %v193_v56 = vpop.eup %192 }
 0x22c   :  { %v159_v57 = vadd.f32 %v170_v54, %v150_v55  ;;  %v142_v58 = vmul.f32 %v193_v56, %v126_v41 }
 0x22e   :  { %161 = vst.msk [vmem:[%s298_s6] sm:$0xff] %vm28_vm0, %v159_v57  ;;  %v151_v59 = vmul.f32 %v169_v52, %v142_v58 }
 0x230   :  { %v160_v60 = vadd.f32 %v170_v54, %v151_v59 }
 0x232   :  { %162 = vst.msk [vmem:[%s298_s6 + $0x8] sm:$0xff] %vm28_vm0, %v160_v60 }

// kernel: transformer_forward.40
= control target key start
LH: loop header
LB: loop body
LE: loop exit
PB: predicated region body
PF: predicated region fallthrough
CT: control target
= control target key end

     0   :  { %s1182_s15 = smov 0   ;;  %s1289_s0 = inlined_call_operand.vmem [shape: f32[2,8,32], index: 0, kind: input, shape index: {}]   ;;  %s1290_s1 = inlined_call_operand.vmem [shape: f32[2,8,32], index: 1, kind: input, shape index: {}]   ;;  %s1291_s2 = inlined_call_operand.vmem [shape: f32[2,8,32], index: 2, kind: input, shape index: {}]   ;;  %s1292_s3 = inlined_call_operand.vmem [shape: f32[2,1,8], index: 3, kind: input, shape index: {}]   ;;  %s1293_s4 = inlined_call_operand.vmem [shape: f32[2,8,32], index: 4, kind: output, shape index: {}]  }
   0x1 LB: > { %s1028_s16 = sadd.s32 4294967295, %s1146_s15   ;;  %p1032_p0 = scmp.ge.s32.totalorder %s1146_s15, 1  ;;  %s1146_s15 = sphi %s1182_s15, %s14_s15  }
   0x2   : > { %p187_p1 = scmp.lt.s32.totalorder %s1146_s15, 3 }
   0x4   : > { %p188_p2 = pnand %p1032_p0, %p187_p1 }
   0x5   : > { %p222_p3 = scmp.lt.s32.totalorder (!%p188_p2), %s1028_s16, 1  ;;  %v1148_v0 = vmov (!%p188_p2), 0.0   ;;  %vm1149_vm0 = vmmov (!%p188_p2), 0   ;;  %vm258_vm1 = vcmask (!%p188_p2), 64512   ;;  %v246_v3 = vlaneseq (!%p188_p2)  ;;  %s1151_s27 = smov (!%p188_p2), 120  }
   0x6   : > { %191 = sbr.rel (%p188_p2) target bundleno = 1464 (0x5b8), region = 36  ;;  %1067 = vmatprep.subr.mxu0 (!%p188_p2), %v1148_v0  ;;  %1069 = vmatprep.mubr.msk.f32.mxu0 (!%p188_p2), %vm1149_vm0, %v1148_v0  ;;  %v1150_v7 = vmov (!%p188_p2), 0   ;;  %s1152_s28 = smov (!%p188_p2), 112   ;;  %vm936_vm6 = vcmask (!%p188_p2), 130048   ;;  %vm938_vm7 = vcmask (!%p188_p2), 195584   ;;  %vm940_vm8 = vcmask (!%p188_p2), 261120  }
   0x7   : > { %1072 = vmatprep.subr.mxu1 (!%p188_p2), %v1148_v0  ;;  %1074 = vmatprep.mubr.msk.f32.mxu1 (!%p188_p2), %vm1149_vm0, %v1148_v0  ;;  %v247_v5 = vshrl.u32 (!%p188_p2), %v246_v3, 7  ;;  %v249_v9 = vand.u32 (!%p188_p2), 127, %v246_v3  ;;  %s1153_s29 = smov (!%p188_p2), 104   ;;  %s1154_s7 = smov (!%p188_p2), 8  }
   0x8   : > { %s1155_s8 = smov (!%p188_p2), 16   ;;  %s1156_s9 = smov (!%p188_p2), 24  }
   0x9   : > { %v254_v6 = vsub.s32 (!%p188_p2), 0, %v247_v5  ;;  %vm250_vm3 = vcmp.le.s32.totalorder (!%p188_p2), %v249_v9, %v247_v5 }
   0xd   : > { %s1297_s16 = smov (!%p222_p3, %s1028_s16), 1 }
   0xe   : > { %s1196_s17 = sshll.u32 %s1297_s16, 3  ;;  %s236_s26 = scalar_lea.vmem %s1292_s3, %s1297_s16 }
   0xf   : > { %s229_s20 = scalar_lea.vmem %s1290_s1, %s1196_s17  ;;  %s225_s23 = scalar_lea.vmem %s1289_s0, %s1196_s17  ;;  %v244_v4 = vld [vmem:[%s236_s26] sm:$0x1] }
  0x10   : > { %v242_v1 = vld [vmem:[%s229_s20] sm:$0xff]  ;;  %vm245_vm2 = vcmp.gt.f32.partialorder %v244_v4, 0.0  ;;  %s233_s6 = scalar_lea.vmem %s1291_s2, %s1196_s17  ;;  %s240_s12 = scalar_lea.vmem %s1293_s4, %s1196_s17 }
  0x11   : > { %1068 = vmatpush3.xpose.msk.msra.mxu0 %vm258_vm1, %v242_v1  ;;  %v241_v2 = vld [vmem:[%s225_s23] sm:$0xff]  ;;  %v251_v8 = vsel %vm245_vm2, 1, %v1150_v7  ;;  %423 = vrot.lane.b32.xlu1 %v242_v1, %s1151_s27 }
  0x12   : > { %1082 = vmatprep.subr.mxu0 %v1148_v0  ;;  %v255_v10 = vrot.slane %v251_v8, %v254_v6  ;;  %v1231_v22 = vld [vmem:[%s233_s6] sm:$0xff] }
  0x13   : > { %1073 = vmatpush3.msra.mxu1 %v1231_v22 }
  0x14   : > { %1070 = vmatmul.mubr.msk.f32.vlgmr.msra.gmra.mrb[0].mxu0 %vm258_vm1, %v241_v2  ;;  %vm256_vm4 = vcmp.eq.s32.totalorder %v255_v10, 1  ;;  %1077 = vmatprep.subr.mxu1 %v1148_v0 }
  0x15   : > { %1084 = vmatprep.mubr.msk.f32.mxu0 %vm1149_vm0, %v1148_v0  ;;  %vm1214_vm5 = vmand %vm256_vm4, %vm250_vm3  ;;  %421 = vrot.lane.b32.xlu1 %v241_v2, %s1151_s27 }
  0x19   : > { %589 = vrot.lane.b32.xlu1 %v241_v2, %s1152_s28 }
  0x1d   : > { %758 = vrot.lane.b32.xlu1 %v242_v1, %s1153_s29 }
  0x21   : > { %756 = vrot.lane.b32.xlu1 %v241_v2, %s1153_s29 }
  0x83   : > { %v424_v23 = vpop.permute.xlu1 %423 }
  0x87   : > { %v422_v25 = vpop.permute.xlu1 %421 }
  0x8b   : > { %v590_v27 = vpop.permute.xlu1 %589 }
  0x8f   : > { %v759_v30 = vpop.permute.xlu1 %758 }
  0x93   : > { %v757_v31 = vpop.permute.xlu1 %756 }
  0xe7   : > { %v331_v11 = vpop.f32.mrb[0].mxu0 }
  0xe8   : > { %v335_v13 = vmul.f32 0.35355338, %v331_v11  ;;  %v1071_v14 = vpop.f32.mrb[1].mxu0 }
  0xea   : > { %v336_v15 = vsel %vm1214_vm5, %v335_v13, -1e+09 }
  0xeb   : > { %v337_v16 = vsel %vm258_vm1, %v336_v15, -inf }
  0xec   : > { %338 = vmax.xlane.f32.xlu0 %v337_v16 }
 0x179   : > { %v339_v17 = vpop.xlane.xlu0 %338 }
 0x17a   : > { %v340_v18 = vsub.f32 %v336_v15, %v339_v17 }
 0x17c   : > { %v341_v19 = vmul.f32 1.442695, %v340_v18 }
 0x17e   : > { %1124 = vpow2.f32 %v341_v19 }
 0x188   : > { %v1125_v20 = vpop.eup %1124 }
 0x189   : > { %v343_v21 = vsel %vm258_vm1, %v1125_v20, 0.0 }
 0x18a   : > { %344 = vadd.xlane.f32.xlu0 %v343_v21 }
 0x1a0   : > { %591 = vrot.lane.b32.xlu0 %v242_v1, %s1152_s28 }
 0x217   : > { %v345_v24 = vpop.xlane.xlu0 %344 }
 0x218   : > { %1126 = vrcp.f32 %v345_v24 }
 0x21b   : > { %v592_v29 = vpop.permute.xlu0 %591 }
 0x222   : > { %v1127_v26 = vpop.eup %1126 }
 0x223   : > { %v347_v28 = vmul.f32 %v1127_v26, %v1125_v20 }
 0x225   : > { %1075 = vmatmul.mubr.msk.f32.vlgmr.msra.gmra.mrb[0].mxu1 %vm258_vm1, %v347_v28 }
 0x226   : > { %1078 = vmatpush3.xpose.msk.msra.mxu1 %vm258_vm1, %v424_v23  ;;  %1079 = vmatprep.mubr.msk.f32.mxu1 %vm1149_vm0, %v1148_v0 }
 0x227   : > { %1087 = vmatprep.subr.mxu1 %v1148_v0 }
 0x229   : > { %1080 = vmatmul.mubr.msk.f32.vlgmr.msra.gmra.mrb[2].mxu1 %vm258_vm1, %v422_v25 }
 0x22a   : > { %1088 = vmatpush3.xpose.msk.msra.mxu1 %vm258_vm1, %v592_v29  ;;  %1089 = vmatprep.mubr.msk.f32.mxu1 %vm1149_vm0, %v1148_v0 }
 0x22b   : > { %1097 = vmatprep.subr.mxu1 %v1148_v0 }
 0x22d   : > { %1090 = vmatmul.mubr.msk.f32.vlgmr.msra.gmra.mrb[4].mxu1 %vm258_vm1, %v590_v27 }
 0x22e   : > { %1098 = vmatpush3.xpose.msk.msra.mxu1 %vm258_vm1, %v759_v30  ;;  %1099 = vmatprep.mubr.msk.f32.mxu1 %vm1149_vm0, %v1148_v0 }
 0x231   : > { %1100 = vmatmul.mubr.msk.f32.vlgmr.msra.gmra.mrb[6].mxu1 %vm258_vm1, %v757_v31 }
 0x2f8   : > { %v1251_v32 = vpop.f32.mrb[0].mxu1 }
 0x2f9   : > { %v1076_v33 = vpop.f32.mrb[1].mxu1 }
 0x2fc   : > { %v495_v34 = vpop.f32.mrb[2].mxu1 }
 0x2fd   : > { %v499_v35 = vmul.f32 0.35355338, %v495_v34  ;;  %v1081_v36 = vpop.f32.mrb[3].mxu1 }
 0x2ff   : > { %v500_v37 = vsel %vm1214_vm5, %v499_v35, -1e+09 }
 0x300   : > { %v663_v38 = vpop.f32.mrb[4].mxu1  ;;  %v501_v39 = vsel %vm258_vm1, %v500_v37, -inf }
 0x301   : > { %v667_v40 = vmul.f32 0.35355338, %v663_v38  ;;  %502 = vmax.xlane.f32.xlu1 %v501_v39  ;;  %v1091_v41 = vpop.f32.mrb[5].mxu1 }
 0x303   : > { %v668_v42 = vsel %vm1214_vm5, %v667_v40, -1e+09 }
 0x304   : > { %v830_v43 = vpop.f32.mrb[6].mxu1  ;;  %v669_v44 = vsel %vm258_vm1, %v668_v42, -inf }
 0x305   : > { %v834_v45 = vmul.f32 0.35355338, %v830_v43  ;;  %670 = vmax.xlane.f32.xlu0 %v669_v44  ;;  %v1101_v46 = vpop.f32.mrb[7].mxu1 }
 0x307   : > { %v835_v47 = vsel %vm1214_vm5, %v834_v45, -1e+09 }
 0x308   : > { %v836_v48 = vsel %vm258_vm1, %v835_v47, -inf }
 0x309   : > { %837 = vmax.xlane.f32.xlu1 %v836_v48 }
 0x38e   : > { %v503_v49 = vpop.xlane.xlu1 %502 }
 0x38f   : > { %v504_v50 = vsub.f32 %v500_v37, %v503_v49 }
 0x391   : > { %v505_v51 = vmul.f32 1.442695, %v504_v50 }
 0x392   : > { %v671_v52 = vpop.xlane.xlu0 %670 }
 0x393   : > { %1128 = vpow2.f32 %v505_v51  ;;  %v672_v53 = vsub.f32 %v668_v42, %v671_v52 }
 0x395   : > { %v673_v54 = vmul.f32 1.442695, %v672_v53 }
 0x396   : > { %v838_v59 = vpop.xlane.xlu1 %837 }
 0x397   : > { %1130 = vpow2.f32 %v673_v54  ;;  %v839_v60 = vsub.f32 %v835_v47, %v838_v59 }
 0x399   : > { %v840_v61 = vmul.f32 1.442695, %v839_v60 }
 0x39b   : > { %1132 = vpow2.f32 %v840_v61 }
 0x39d   : > { %v1129_v55 = vpop.eup %1128 }
 0x39e   : > { %v507_v56 = vsel %vm258_vm1, %v1129_v55, 0.0 }
 0x39f   : > { %508 = vadd.xlane.f32.xlu1 %v507_v56 }
 0x3a1   : > { %v1131_v57 = vpop.eup %1130 }
 0x3a2   : > { %v675_v58 = vsel %vm258_vm1, %v1131_v57, 0.0 }
 0x3a3   : > { %676 = vadd.xlane.f32.xlu0 %v675_v58 }
 0x3a5   : > { %v1133_v62 = vpop.eup %1132 }
 0x3a6   : > { %v842_v63 = vsel %vm258_vm1, %v1133_v62, 0.0 }
 0x3b0   : > { %680 = vrot.lane.b32.xlu1 %v1231_v22, %s1152_s28 }
 0x3b9   : > { %513 = vrot.lane.b32.xlu0 %v1231_v22, %s1151_s27 }
 0x3d4   : > { %843 = vadd.xlane.f32.xlu1 %v842_v63 }
 0x3e5   : > { %847 = vrot.lane.b32.xlu1 %v1231_v22, %s1153_s29 }
 0x42c   : > { %v509_v1 = vpop.xlane.xlu1 %508 }
 0x42d   : > { %1134 = vrcp.f32 %v509_v1 }
 0x430   : > { %v677_v2 = vpop.xlane.xlu0 %676  ;;  %v681_v6 = vpop.permute.xlu1 %680 }
 0x431   : > { %1136 = vrcp.f32 %v677_v2 }
 0x434   : > { %v514_v3 = vpop.permute.xlu0 %513 }
 0x435   : > { %1083 = vmatpush3.msra.mxu0 %v514_v3 }
 0x436   : > { %1092 = vmatprep.subr.mxu0 %v1148_v0 }
 0x437   : > { %v1135_v4 = vpop.eup %1134 }
 0x438   : > { %v511_v5 = vmul.f32 %v1135_v4, %v1129_v55 }
 0x43a   : > { %1085 = vmatmul.mubr.msk.f32.vlgmr.msra.gmra.mrb[2].mxu0 %vm258_vm1, %v511_v5 }
 0x43b   : > { %v1137_v7 = vpop.eup %1136  ;;  %1093 = vmatpush3.msra.mxu0 %v681_v6  ;;  %1094 = vmatprep.mubr.msk.f32.mxu0 %vm1149_vm0, %v1148_v0 }
 0x43c   : > { %v679_v8 = vmul.f32 %v1137_v7, %v1131_v57  ;;  %1102 = vmatprep.subr.mxu0 %v1148_v0 }
 0x43e   : > { %1095 = vmatmul.mubr.msk.f32.vlgmr.msra.gmra.mrb[4].mxu0 %vm258_vm1, %v679_v8 }
 0x43f   : > { %1104 = vmatprep.mubr.msk.f32.mxu0 %vm1149_vm0, %v1148_v0 }
 0x461   : > { %v844_v9 = vpop.xlane.xlu1 %843 }
 0x462   : > { %1138 = vrcp.f32 %v844_v9 }
 0x465   : > { %v848_v10 = vpop.permute.xlu1 %847 }
 0x466   : > { %1103 = vmatpush3.msra.mxu0 %v848_v10 }
 0x46c   : > { %v1139_v11 = vpop.eup %1138 }
 0x46d   : > { %v846_v12 = vmul.f32 %v1139_v11, %v1133_v62 }
 0x46f   : > { %1105 = vmatmul.mubr.msk.f32.vlgmr.msra.gmra.mrb[6].mxu0 %vm258_vm1, %v846_v12 }
 0x50d   : > { %v585_v13 = vpop.f32.mrb[2].mxu0 }
 0x50e   : > { %924 = vrot.lane.b32.xlu0 %v585_v13, %s1154_s7  ;;  %v1086_v14 = vpop.f32.mrb[3].mxu0 }
 0x511   : > { %v752_v15 = vpop.f32.mrb[4].mxu0 }
 0x512   : > { %928 = vrot.lane.b32.xlu1 %v752_v15, %s1155_s8  ;;  %v1096_v16 = vpop.f32.mrb[5].mxu0 }
 0x542   : > { %v919_v17 = vpop.f32.mrb[6].mxu0 }
 0x543   : > { %932 = vrot.lane.b32.xlu0 %v919_v17, %s1156_s9  ;;  %v1106_v0 = vpop.f32.mrb[7].mxu0 }
 0x580   : > { %v925_v18 = vpop.permute.xlu0 %924 }
 0x581   : > { %v935_v20 = vsel %vm258_vm1, %v1251_v32, %v925_v18 }
 0x584   : > { %v929_v19 = vpop.permute.xlu1 %928 }
 0x585   : > { %v937_v21 = vsel %vm936_vm6, %v935_v20, %v929_v19 }
 0x5b5   : > { %v933_v22 = vpop.permute.xlu0 %932 }
 0x5b6   : > { %v939_v23 = vsel %vm938_vm7, %v937_v21, %v933_v22 }
 0x5b7   : > { %941 = vst.msk [vmem:[%s240_s12] sm:$0xff] %vm940_vm8, %v939_v23 }
 0x5b8 PF: > { %s14_s15 = sadd.s32 1, %s1146_s15  }
 0x5b9   : > { %p11_p4 = scmp.ge.s32.totalorder %s14_s15, 4  }
 0x5bb   :  { %13 = sbr.rel (!%p11_p4) target bundleno = 1 (0x1), region = 75 }

// kernel: transformer_forward.57
= control target key start
LH: loop header
LB: loop body
LE: loop exit
PB: predicated region body
PF: predicated region fallthrough
CT: control target
= control target key end

     0   :  { %v158_v3 = vmov 0.0   ;;  %vm159_vm0 = vmmov 0   ;;  %vm20_vm1 = vcmask 392192   ;;  %s222_s0 = inlined_call_operand.vmem [shape: f32[16,32], index: 0, kind: input, shape index: {}]   ;;  %s223_s1 = inlined_call_operand.vmem [shape: f32[32,48], index: 1, kind: input, shape index: {}]   ;;  %s224_s2 = inlined_call_operand.vmem [shape: f32[1,48], index: 2, kind: input, shape index: {}]   ;;  %s225_s3 = inlined_call_operand.hbm [shape: f32[16,48], index: 3, kind: output, shape index: {}]  }
   0x1   :  { %v28_v0 = vld [vmem:[%s223_s1] sm:$0xff]  ;;  %v29_v1 = vld [vmem:[%s223_s1 + $0x8] sm:$0xff]  ;;  %v30_v2 = vld [vmem:[%s223_s1 + $0x10] sm:$0xff]  ;;  %121 = vmatprep.subr.bf16.mxu0 %v158_v3  ;;  %125 = vmatprep.mubr.msk.bf16.mxu0 %vm159_vm0, %v158_v3  ;;  %21 = vst.msk [vmem:[#allocation2] sm:$0xff] %vm20_vm1, %v158_v3 }
   0x2   :  { %v32_v4 = vpack.c.bf16 %v29_v1, %v28_v0  ;;  %v31_v5 = vld [vmem:[%s223_s1 + $0x18] sm:$0xff]  ;;  %22 = vst.msk [vmem:[#allocation2 + $0x8] sm:$0xff] %vm20_vm1, %v158_v3 }
   0x3   :  { %8 = vsyncpa [#allocation4], 0  ;;  %v33_v6 = vpack.c.bf16 %v31_v5, %v30_v2  ;;  %v25_v7 = vld [vmem:[%s222_s0] sm:$0xff]  ;;  %v26_v8 = vld [vmem:[%s222_s0 + $0x8] sm:$0xff]  ;;  %vm34_vm2 = vcmask 261120   ;;  %s160_s0 = smov [#allocation3]  }
   0x4   :  { %122 = vmatpush3.bf16.msra.mxu0 %v32_v4  ;;  %v27_v9 = vpack.c.bf16 %v26_v8, %v25_v7  ;;  %v117_v18 = vld [vmem:[%s224_s2] ss:$0 sm:$0xff]  ;;  %s105_s25 = sshll.u32 %s160_s0, 4  ;;  %s106_s25 = int_to_ptr.vmem [resolvable:$true] %s105_s25 }
   0x5   :  { %123 = vmatprep.subr.bf16.mxu0 %v158_v3  ;;  %s134_s26 = scalar_lea.vmem %s106_s25, 256  ;;  %p139_p1 = scmp.lt.s32.totalorder %s106_s25, %s106_s25 }
   0x6   :  { %p135_p0 = scmp.ne.s32.totalorder %s106_s25, %s134_s26  ;;  %p140_p2 = scmp.lt.s32.totalorder %s134_s26, %s134_s26 }
   0x8   :  { %124 = vmatpush3.bf16.msra.mxu0 %v33_v6  ;;  %v23_v10 = vld [vmem:[#allocation2] sm:$0xff]  ;;  %p141_p3 = por %p140_p2, %p139_p1 }
   0x9   :  { %v24_v12 = vld [vmem:[#allocation2 + $0x8] sm:$0xff] }
   0xa   :  { %p142_p4 = pnand %p141_p3, %p135_p0 }
   0xb   :  { %126 = vmatmul.mubr.msk.bf16.vlgmr.msra.gmra.mrb[0].mxu0 %vm34_vm2, %v27_v9 }
  0xde   :  { %v72_v11 = vpop.f32.mrb[0].mxu0 }
  0xdf   :  { %v79_v13 = vadd.f32 %v72_v11, %v23_v10  ;;  %v127_v14 = vpop.f32.mrb[1].mxu0 }
  0xe0   :  { %v75_v15 = vpop.f32.mrb[2].mxu0 }
  0xe1   :  { %82 = vst.msk [vmem:[#allocation2] sm:$0xff] %vm20_vm1, %v79_v13  ;;  %v80_v16 = vadd.f32 %v75_v15, %v24_v12  ;;  %v128_v17 = vpop.f32.mrb[3].mxu0 }
  0xe3   :  { %83 = vst.msk [vmem:[#allocation2 + $0x8] sm:$0xff] %vm20_vm1, %v80_v16 }
  0xe8   :  { %v87_v19 = vld [vmem:[#allocation2] sm:$0xff] }
  0xe9   :  { %v96_v20 = vadd.f32 %v117_v18, %v87_v19 }
  0xea   :  { %v88_v21 = vld [vmem:[#allocation2 + $0x8] sm:$0xff] }
  0xeb   :  { %v97_v22 = vadd.f32 %v117_v18, %v88_v21  ;;  %98 = vst.msk [vmem:[#allocation3] sm:$0xff] %vm20_vm1, %v96_v20 }
  0xed   :  { %99 = vst.msk [vmem:[#allocation3 + $0x8] sm:$0xff] %vm20_vm1, %v97_v22 }
  0xee   :  { %145 = shalt.err (!%p142_p4)
}
  0xef   :  { %s146_s28 = scalar_lea.hbm %s225_s3, 256 }
  0xf0   :  { %p147_p5 = scmp.ne.s32.totalorder %s225_s3, %s146_s28  ;;  %p150_p6 = scmp.lt.u32.totalorder %s146_s28, %s225_s3 }
  0xf2   :  { %p152_p7 = pnand %p150_p6, %p147_p5 }
  0xf4   :  { %155 = shalt.err (!%p152_p7)
}
  0xf5   :  { %s161_s6 = smov 128   ;;  %s162_s7 = smov 8  }
  0xf6   :  { %111 = dma.vmem_to_hbm [thread:$0]  %s106_s25, 256, %s225_s3, [#allocation4], %s161_s6, %s161_s6, %s162_s7  }
  0xf7   :  { %156 = dma.done.wait [#allocation4], 256  }
  0xf8   :  { %157 = vsyncadd [#allocation4], 4294967040 }
  0xf9   :  { %115 = vsyncpa [#allocation4], 1 }

</bundles_post_ra>
